<compile_context>
chip_gen: v7x
topology: tpu7x:2x2x1
jax: 0.10.0
libtpu: 0.0.40
codegen_flags: <defaults>
</compile_context>

<pallas_src>
import functools

import jax
import jax.numpy as jnp
from jax import lax
from jax.experimental import pallas as pl
from jax.experimental.pallas import tpu as pltpu


def _fusion_kernel(n_heads,
                   video_ref, pos_ref,
                   ln1_g_ref, ln1_b_ref,
                   wqkv_ref, bqkv_ref,
                   wo_ref, bo_ref,
                   ln2_g_ref, ln2_b_ref,
                   w1_ref, b1_ref, w2_ref, b2_ref,
                   video_out_ref):
    BB, T, D = video_ref.shape
    dh = D // n_heads
    M = BB * T
    eps_ln = 1e-5

    v0_3d = video_ref[...].astype(jnp.float32)                       # (BB, T, D)
    x3 = v0_3d + pos_ref[...].astype(jnp.float32)[None, :, :]        # + positional embedding
    x = x3.reshape(M, D)                                             # fold frames into GEMM M
    v0 = v0_3d.reshape(M, D)

    def layer_norm(z, g_ref, b_ref):
        mu = jnp.mean(z, axis=-1, keepdims=True)
        var = jnp.mean((z - mu) ** 2, axis=-1, keepdims=True)
        zn = (z - mu) * lax.rsqrt(var + eps_ln)
        return zn * g_ref[...].astype(jnp.float32) + b_ref[...].astype(jnp.float32)

    # ---- multi-head self-attention (pre-LN), fused QKV projection ----
    h = layer_norm(x, ln1_g_ref, ln1_b_ref)
    qkv = jnp.dot(h.astype(jnp.bfloat16), wqkv_ref[...],
                  preferred_element_type=jnp.float32) + bqkv_ref[...]        # (M, 3D) f32
    qkv3 = qkv.reshape(BB, T, 3 * D)

    scale = 1.0 / (float(dh) ** 0.5)
    attn = jnp.zeros((M, D), jnp.float32)
    for hd in range(n_heads):
        qs = (qkv3[:, :, hd * dh:(hd + 1) * dh] * scale).astype(jnp.bfloat16)      # (BB, T, dh)
        ks = qkv3[:, :, D + hd * dh:D + (hd + 1) * dh].astype(jnp.bfloat16)
        vs = qkv3[:, :, 2 * D + hd * dh:2 * D + (hd + 1) * dh].astype(jnp.bfloat16)

        s = jnp.einsum('bqd,bkd->bqk', qs, ks,
                       preferred_element_type=jnp.float32)                   # (BB, T, T)
        s = s - jnp.max(s, axis=-1, keepdims=True)
        p = jnp.exp(s)
        p = p * pl.reciprocal(jnp.sum(p, axis=-1, keepdims=True), approx=True)
        o_h = jnp.einsum('bqk,bkd->bqd', p.astype(jnp.bfloat16), vs,
                         preferred_element_type=jnp.float32)                 # (BB, T, dh)

        # Project this head through its slab of Wo and accumulate (no lane concat).
        attn = attn + jnp.dot(o_h.reshape(M, dh).astype(jnp.bfloat16),
                              wo_ref[hd * dh:(hd + 1) * dh, :],
                              preferred_element_type=jnp.float32)
    x = x + attn + bo_ref[...]

    # ---- MLP block (pre-LN), QuickGELU ----
    h2 = layer_norm(x, ln2_g_ref, ln2_b_ref)
    m = jnp.dot(h2.astype(jnp.bfloat16), w1_ref[...],
                preferred_element_type=jnp.float32) + b1_ref[...]
    m = m * jax.nn.sigmoid(1.702 * m)                                 # QuickGELU
    m = jnp.dot(m.astype(jnp.bfloat16), w2_ref[...],
                preferred_element_type=jnp.float32) + b2_ref[...]
    x = x + m

    # ---- outer residual + temporal mean pooling ----
    pooled = jnp.mean((x + v0).reshape(BB, T, D), axis=1)             # (BB, D)

    # ---- F.normalize (p=2, dim=-1), norm clamped at 1e-12 ----
    nrm2 = jnp.sum(pooled * pooled, axis=-1, keepdims=True)
    inv = lax.rsqrt(jnp.maximum(nrm2, 1e-24))                         # == 1 / max(||x||, 1e-12)
    video_out_ref[...] = (pooled * inv).astype(video_out_ref.dtype)


def _pick_batch_block(B, T):
    """Largest divisor of B with BB*T <= 256 rows and a layout-legal output block."""
    valid = [d for d in range(1, B + 1)
             if B % d == 0 and (d % 8 == 0 or d == B) and d * T <= 256]
    if not valid:
        return B
    bb = max(valid)
    # v7x has 2 TensorCores: prefer >= 2 grid steps if we can keep M >= 64.
    two_step = [d for d in valid if B // d >= 2 and d * T >= 64]
    if B // bb == 1 and two_step:
        bb = max(two_step)
    return bb


def video_attention_fusion(text_emb, video_emb_flat, params, n_heads):
    """text_emb: (B, D); video_emb_flat: (B*T, D) — mirrors the PyTorch call signature."""
    B, D = text_emb.shape
    assert D % n_heads == 0
    video = video_emb_flat.reshape(B, -1, video_emb_flat.shape[1])    # (B, T, D)
    T = video.shape[1]
    H = params["w1"].shape[1]                                         # 4*D

    BB = _pick_batch_block(B, T)
    grid = (B // BB,)

    def full_spec(shape):
        return pl.BlockSpec(shape, lambda b, n=len(shape): (0,) * n)

    in_specs = [
        pl.BlockSpec((BB, T, D), lambda b: (b, 0, 0)),    # video block
        full_spec((T, D)),                                # pos
        full_spec((1, D)), full_spec((1, D)),             # ln1 gamma/beta
        full_spec((D, 3 * D)), full_spec((1, 3 * D)),     # fused Wqkv, bqkv
        full_spec((D, D)), full_spec((1, D)),             # Wo, bo
        full_spec((1, D)), full_spec((1, D)),             # ln2 gamma/beta
        full_spec((D, H)), full_spec((1, H)),             # W1, b1
        full_spec((H, D)), full_spec((1, D)),             # W2, b2
    ]
    out_specs = pl.BlockSpec((BB, D), lambda b: (b, 0))

    kernel = functools.partial(_fusion_kernel, n_heads)

    video_out = pl.pallas_call(
        kernel,
        out_shape=jax.ShapeDtypeStruct((B, D), jnp.float32),
        grid=grid,
        in_specs=in_specs,
        out_specs=out_specs,
        compiler_params=pltpu.CompilerParams(
            dimension_semantics=("parallel",),
            vmem_limit_bytes=48 * 1024 * 1024),
    )(video,
      params["pos"],
      params["ln1_g"], params["ln1_b"],
      params["wqkv"], params["bqkv"],
      params["wo"], params["bo"],
      params["ln2_g"], params["ln2_b"],
      params["w1"], params["b1"],
      params["w2"], params["b2"])

    # Text l2-norm is independent of the transformer: let XLA fuse it (free),
    # keeps an input+output DMA pair out of every kernel grid step.
    t = text_emb.astype(jnp.float32)
    tn = jnp.sqrt(jnp.sum(t * t, axis=-1, keepdims=True))
    text_out = t / jnp.maximum(tn, 1e-12)
    return text_out, video_out


def init_params(key, T, D):
    H = 4 * D
    ks = jax.random.split(key, 6)
    std = 0.02

    def nrm(k, shape, dtype=jnp.bfloat16):
        # Weights stored bf16 (MXU-native on v6e/v7x, halves VMEM + HBM DMA).
        return (std * jax.random.normal(k, shape, jnp.float32)).astype(dtype)

    return {
        "pos":   nrm(ks[0], (T, D), jnp.float32),
        "ln1_g": jnp.ones((1, D), jnp.float32),
        "ln1_b": jnp.zeros((1, D), jnp.float32),
        "wqkv":  nrm(ks[1], (D, 3 * D)),                 # fused [Wq | Wk | Wv], (in, out)
        "bqkv":  jnp.zeros((1, 3 * D), jnp.float32),
        "wo":    nrm(ks[2], (D, D)),
        "bo":    jnp.zeros((1, D), jnp.float32),
        "ln2_g": jnp.ones((1, D), jnp.float32),
        "ln2_b": jnp.zeros((1, D), jnp.float32),
        "w1":    nrm(ks[3], (D, H)),
        "b1":    jnp.zeros((1, H), jnp.float32),
        "w2":    nrm(ks[4], (H, D)),
        "b2":    jnp.zeros((1, D), jnp.float32),
    }


if __name__ == "__main__":
    B, T, D = 2, 8, 128          # small shapes: batch=2, frames=8, emb_dim=128 (heads = D//64 = 2)
    n_heads = D // 64

    key = jax.random.PRNGKey(0)
    k_text, k_video, k_params = jax.random.split(key, 3)

    text_emb = jax.random.normal(k_text, (B, D), jnp.float32)
    video_emb_flat = jax.random.normal(k_video, (B * T, D), jnp.float32)   # (B*T, D), as in PyTorch
    params = init_params(k_params, T, D)

    text_out, video_out = video_attention_fusion(text_emb, video_emb_flat, params, n_heads)
    jax.block_until_ready((text_out, video_out))

    assert text_out.shape == (B, D) and video_out.shape == (B, D)
    print("KERNEL_OK")
</pallas_src>

<mosaic_0001>
module attributes {stable_mosaic.version = 11 : i64} {
  func.func @_fusion_kernel(%arg0: i32, %arg1: memref<2x8x128xf32, #tpu.memory_space<vmem>>, %arg2: memref<8x128xf32, #tpu.memory_space<vmem>>, %arg3: memref<1x128xf32, #tpu.memory_space<vmem>>, %arg4: memref<1x128xf32, #tpu.memory_space<vmem>>, %arg5: memref<128x384xbf16, #tpu.memory_space<vmem>>, %arg6: memref<1x384xf32, #tpu.memory_space<vmem>>, %arg7: memref<128x128xbf16, #tpu.memory_space<vmem>>, %arg8: memref<1x128xf32, #tpu.memory_space<vmem>>, %arg9: memref<1x128xf32, #tpu.memory_space<vmem>>, %arg10: memref<1x128xf32, #tpu.memory_space<vmem>>, %arg11: memref<128x512xbf16, #tpu.memory_space<vmem>>, %arg12: memref<1x512xf32, #tpu.memory_space<vmem>>, %arg13: memref<512x128xbf16, #tpu.memory_space<vmem>>, %arg14: memref<1x128xf32, #tpu.memory_space<vmem>>, %arg15: memref<2x128xf32, #tpu.memory_space<vmem>>) attributes {dimension_semantics = [#tpu.dimension_semantics<parallel>], iteration_bounds = array<i64: 1>, scalar_prefetch = 0 : i64, scratch_operands = 0 : i64, tpu.core_type = #tpu.core_type<tc>, window_params = [{transform_indices = @transform_0, window_bounds = array<i64: 2, 8, 128>}, {pipeline_mode = #tpu.pipeline_mode<synchronous>, transform_indices = @transform_1, window_bounds = array<i64: 8, 128>}, {pipeline_mode = #tpu.pipeline_mode<synchronous>, transform_indices = @transform_2, window_bounds = array<i64: 1, 128>}, {pipeline_mode = #tpu.pipeline_mode<synchronous>, transform_indices = @transform_3, window_bounds = array<i64: 1, 128>}, {pipeline_mode = #tpu.pipeline_mode<synchronous>, transform_indices = @transform_4, window_bounds = array<i64: 128, 384>}, {pipeline_mode = #tpu.pipeline_mode<synchronous>, transform_indices = @transform_5, window_bounds = array<i64: 1, 384>}, {pipeline_mode = #tpu.pipeline_mode<synchronous>, transform_indices = @transform_6, window_bounds = array<i64: 128, 128>}, {pipeline_mode = #tpu.pipeline_mode<synchronous>, transform_indices = @transform_7, window_bounds = array<i64: 1, 128>}, {pipeline_mode = #tpu.pipeline_mode<synchronous>, transform_indices = @transform_8, window_bounds = array<i64: 1, 128>}, {pipeline_mode = #tpu.pipeline_mode<synchronous>, transform_indices = @transform_9, window_bounds = array<i64: 1, 128>}, {pipeline_mode = #tpu.pipeline_mode<synchronous>, transform_indices = @transform_10, window_bounds = array<i64: 128, 512>}, {pipeline_mode = #tpu.pipeline_mode<synchronous>, transform_indices = @transform_11, window_bounds = array<i64: 1, 512>}, {pipeline_mode = #tpu.pipeline_mode<synchronous>, transform_indices = @transform_12, window_bounds = array<i64: 512, 128>}, {pipeline_mode = #tpu.pipeline_mode<synchronous>, transform_indices = @transform_13, window_bounds = array<i64: 1, 128>}, {transform_indices = @transform_14, window_bounds = array<i64: 2, 128>}]} {
    %c0 = arith.constant 0 : index
    %c0_0 = arith.constant 0 : index
    %c0_1 = arith.constant 0 : index
    %0 = vector.load %arg1[%c0, %c0_0, %c0_1] : memref<2x8x128xf32, #tpu.memory_space<vmem>>, vector<2x8x128xf32>
    %c0_2 = arith.constant 0 : index
    %c0_3 = arith.constant 0 : index
    %1 = vector.load %arg2[%c0_2, %c0_3] : memref<8x128xf32, #tpu.memory_space<vmem>>, vector<8x128xf32>
    %2 = vector.shape_cast %1 : vector<8x128xf32> to vector<1x8x128xf32>
    %3 = vector.broadcast %2 : vector<1x8x128xf32> to vector<2x8x128xf32>
    %4 = arith.addf %0, %3 : vector<2x8x128xf32>
    %5 = vector.shape_cast %4 : vector<2x8x128xf32> to vector<16x128xf32>
    %6 = vector.shape_cast %0 : vector<2x8x128xf32> to vector<16x128xf32>
    %cst = arith.constant dense<0.000000e+00> : vector<16xf32>
    %7 = vector.multi_reduction <add>, %5, %cst [1] : vector<16x128xf32> to vector<16xf32>
    %8 = vector.shape_cast %7 : vector<16xf32> to vector<16x1xf32>
    %cst_4 = arith.constant 1.280000e+02 : f32
    %9 = vector.broadcast %cst_4 : f32 to vector<16x1xf32>
    %10 = arith.divf %8, %9 : vector<16x1xf32>
    %11 = vector.broadcast %10 : vector<16x1xf32> to vector<16x128xf32>
    %12 = arith.subf %5, %11 : vector<16x128xf32>
    %13 = arith.mulf %12, %12 : vector<16x128xf32>
    %cst_5 = arith.constant dense<0.000000e+00> : vector<16xf32>
    %14 = vector.multi_reduction <add>, %13, %cst_5 [1] : vector<16x128xf32> to vector<16xf32>
    %15 = vector.shape_cast %14 : vector<16xf32> to vector<16x1xf32>
    %cst_6 = arith.constant 1.280000e+02 : f32
    %16 = vector.broadcast %cst_6 : f32 to vector<16x1xf32>
    %17 = arith.divf %15, %16 : vector<16x1xf32>
    %18 = vector.broadcast %10 : vector<16x1xf32> to vector<16x128xf32>
    %19 = arith.subf %5, %18 : vector<16x128xf32>
    %cst_7 = arith.constant 9.99999974E-6 : f32
    %20 = vector.broadcast %cst_7 : f32 to vector<16x1xf32>
    %21 = arith.addf %17, %20 : vector<16x1xf32>
    %22 = math.rsqrt %21 : vector<16x1xf32>
    %23 = vector.broadcast %22 : vector<16x1xf32> to vector<16x128xf32>
    %24 = arith.mulf %19, %23 : vector<16x128xf32>
    %c0_8 = arith.constant 0 : index
    %c0_9 = arith.constant 0 : index
    %25 = vector.load %arg3[%c0_8, %c0_9] : memref<1x128xf32, #tpu.memory_space<vmem>>, vector<1x128xf32>
    %26 = vector.broadcast %25 : vector<1x128xf32> to vector<16x128xf32>
    %27 = arith.mulf %24, %26 : vector<16x128xf32>
    %c0_10 = arith.constant 0 : index
    %c0_11 = arith.constant 0 : index
    %28 = vector.load %arg4[%c0_10, %c0_11] : memref<1x128xf32, #tpu.memory_space<vmem>>, vector<1x128xf32>
    %29 = vector.broadcast %28 : vector<1x128xf32> to vector<16x128xf32>
    %30 = arith.addf %27, %29 : vector<16x128xf32>
    %31 = arith.truncf %30 : vector<16x128xf32> to vector<16x128xbf16>
    %c0_12 = arith.constant 0 : index
    %c0_13 = arith.constant 0 : index
    %32 = vector.load %arg5[%c0_12, %c0_13] : memref<128x384xbf16, #tpu.memory_space<vmem>>, vector<128x384xbf16>
    %cst_14 = arith.constant dense<0.000000e+00> : vector<16x384xf32>
    %33 = tpu.matmul %31, %32, %cst_14 {dimension_numbers = #tpu.dot_dimension_numbers<[1], [0], [0], [1], [0, 0, 1, 1], [], []>} : vector<16x128xbf16>, vector<128x384xbf16>, vector<16x384xf32> -> vector<16x384xf32>
    %c0_15 = arith.constant 0 : index
    %c0_16 = arith.constant 0 : index
    %34 = vector.load %arg6[%c0_15, %c0_16] : memref<1x384xf32, #tpu.memory_space<vmem>>, vector<1x384xf32>
    %35 = vector.broadcast %34 : vector<1x384xf32> to vector<16x384xf32>
    %36 = arith.addf %33, %35 : vector<16x384xf32>
    %37 = vector.shape_cast %36 : vector<16x384xf32> to vector<2x8x384xf32>
    %cst_17 = arith.constant 0.000000e+00 : f32
    %38 = vector.broadcast %cst_17 : f32 to vector<16x128xf32>
    %39 = vector.extract_strided_slice %37 {offsets = [0, 0, 0], sizes = [2, 8, 64], strides = [1, 1, 1]} : vector<2x8x384xf32> to vector<2x8x64xf32>
    %cst_18 = arith.constant 1.250000e-01 : f32
    %40 = vector.broadcast %cst_18 : f32 to vector<2x8x64xf32>
    %41 = arith.mulf %39, %40 : vector<2x8x64xf32>
    %42 = arith.truncf %41 : vector<2x8x64xf32> to vector<2x8x64xbf16>
    %43 = vector.extract_strided_slice %37 {offsets = [0, 0, 128], sizes = [2, 8, 64], strides = [1, 1, 1]} : vector<2x8x384xf32> to vector<2x8x64xf32>
    %44 = arith.truncf %43 : vector<2x8x64xf32> to vector<2x8x64xbf16>
    %45 = vector.extract_strided_slice %37 {offsets = [0, 0, 256], sizes = [2, 8, 64], strides = [1, 1, 1]} : vector<2x8x384xf32> to vector<2x8x64xf32>
    %46 = arith.truncf %45 : vector<2x8x64xf32> to vector<2x8x64xbf16>
    "tpu.trace_start"() <{level = 10 : i32, message = "bqd,bkd->bqk"}> : () -> ()
    %cst_19 = arith.constant dense<0.000000e+00> : vector<2x8x8xf32>
    %47 = tpu.matmul %42, %44, %cst_19 {dimension_numbers = #tpu.dot_dimension_numbers<[2], [2], [1], [1], [0, 0, 0, 1, 1, 1], [0], [0]>} : vector<2x8x64xbf16>, vector<2x8x64xbf16>, vector<2x8x8xf32> -> vector<2x8x8xf32>
    "tpu.trace_stop"() : () -> ()
    %cst_20 = arith.constant dense<0xFF800000> : vector<2x8xf32>
    %48 = vector.multi_reduction <maximumf>, %47, %cst_20 [2] : vector<2x8x8xf32> to vector<2x8xf32>
    %49 = vector.shape_cast %48 : vector<2x8xf32> to vector<2x8x1xf32>
    %50 = vector.broadcast %49 : vector<2x8x1xf32> to vector<2x8x8xf32>
    %51 = arith.subf %47, %50 : vector<2x8x8xf32>
    %52 = math.exp %51 : vector<2x8x8xf32>
    %cst_21 = arith.constant dense<0.000000e+00> : vector<2x8xf32>
    %53 = vector.multi_reduction <add>, %52, %cst_21 [2] : vector<2x8x8xf32> to vector<2x8xf32>
    %54 = vector.shape_cast %53 : vector<2x8xf32> to vector<2x8x1xf32>
    %55 = tpu.reciprocal %54 {approx = true} : vector<2x8x1xf32> -> vector<2x8x1xf32>
    %56 = vector.broadcast %55 : vector<2x8x1xf32> to vector<2x8x8xf32>
    %57 = arith.mulf %52, %56 : vector<2x8x8xf32>
    %58 = arith.truncf %57 : vector<2x8x8xf32> to vector<2x8x8xbf16>
    "tpu.trace_start"() <{level = 10 : i32, message = "bqk,bkd->bqd"}> : () -> ()
    %cst_22 = arith.constant dense<0.000000e+00> : vector<2x8x64xf32>
    %59 = tpu.matmul %58, %46, %cst_22 {dimension_numbers = #tpu.dot_dimension_numbers<[2], [1], [1], [2], [0, 0, 0, 1, 1, 2], [0], [0]>} : vector<2x8x8xbf16>, vector<2x8x64xbf16>, vector<2x8x64xf32> -> vector<2x8x64xf32>
    "tpu.trace_stop"() : () -> ()
    %60 = vector.shape_cast %59 : vector<2x8x64xf32> to vector<16x64xf32>
    %61 = arith.truncf %60 : vector<16x64xf32> to vector<16x64xbf16>
    %c0_23 = arith.constant 0 : index
    %c0_24 = arith.constant 0 : index
    %62 = vector.load %arg7[%c0_23, %c0_24] : memref<128x128xbf16, #tpu.memory_space<vmem>>, vector<64x128xbf16>
    %cst_25 = arith.constant dense<0.000000e+00> : vector<16x128xf32>
    %63 = tpu.matmul %61, %62, %cst_25 {dimension_numbers = #tpu.dot_dimension_numbers<[1], [0], [0], [1], [0, 0, 1, 1], [], []>} : vector<16x64xbf16>, vector<64x128xbf16>, vector<16x128xf32> -> vector<16x128xf32>
    %64 = arith.addf %38, %63 : vector<16x128xf32>
    %65 = vector.extract_strided_slice %37 {offsets = [0, 0, 64], sizes = [2, 8, 64], strides = [1, 1, 1]} : vector<2x8x384xf32> to vector<2x8x64xf32>
    %cst_26 = arith.constant 1.250000e-01 : f32
    %66 = vector.broadcast %cst_26 : f32 to vector<2x8x64xf32>
    %67 = arith.mulf %65, %66 : vector<2x8x64xf32>
    %68 = arith.truncf %67 : vector<2x8x64xf32> to vector<2x8x64xbf16>
    %69 = vector.extract_strided_slice %37 {offsets = [0, 0, 192], sizes = [2, 8, 64], strides = [1, 1, 1]} : vector<2x8x384xf32> to vector<2x8x64xf32>
    %70 = arith.truncf %69 : vector<2x8x64xf32> to vector<2x8x64xbf16>
    %71 = vector.extract_strided_slice %37 {offsets = [0, 0, 320], sizes = [2, 8, 64], strides = [1, 1, 1]} : vector<2x8x384xf32> to vector<2x8x64xf32>
    %72 = arith.truncf %71 : vector<2x8x64xf32> to vector<2x8x64xbf16>
    "tpu.trace_start"() <{level = 10 : i32, message = "bqd,bkd->bqk"}> : () -> ()
    %cst_27 = arith.constant dense<0.000000e+00> : vector<2x8x8xf32>
    %73 = tpu.matmul %68, %70, %cst_27 {dimension_numbers = #tpu.dot_dimension_numbers<[2], [2], [1], [1], [0, 0, 0, 1, 1, 1], [0], [0]>} : vector<2x8x64xbf16>, vector<2x8x64xbf16>, vector<2x8x8xf32> -> vector<2x8x8xf32>
    "tpu.trace_stop"() : () -> ()
    %cst_28 = arith.constant dense<0xFF800000> : vector<2x8xf32>
    %74 = vector.multi_reduction <maximumf>, %73, %cst_28 [2] : vector<2x8x8xf32> to vector<2x8xf32>
    %75 = vector.shape_cast %74 : vector<2x8xf32> to vector<2x8x1xf32>
    %76 = vector.broadcast %75 : vector<2x8x1xf32> to vector<2x8x8xf32>
    %77 = arith.subf %73, %76 : vector<2x8x8xf32>
    %78 = math.exp %77 : vector<2x8x8xf32>
    %cst_29 = arith.constant dense<0.000000e+00> : vector<2x8xf32>
    %79 = vector.multi_reduction <add>, %78, %cst_29 [2] : vector<2x8x8xf32> to vector<2x8xf32>
    %80 = vector.shape_cast %79 : vector<2x8xf32> to vector<2x8x1xf32>
    %81 = tpu.reciprocal %80 {approx = true} : vector<2x8x1xf32> -> vector<2x8x1xf32>
    %82 = vector.broadcast %81 : vector<2x8x1xf32> to vector<2x8x8xf32>
    %83 = arith.mulf %78, %82 : vector<2x8x8xf32>
    %84 = arith.truncf %83 : vector<2x8x8xf32> to vector<2x8x8xbf16>
    "tpu.trace_start"() <{level = 10 : i32, message = "bqk,bkd->bqd"}> : () -> ()
    %cst_30 = arith.constant dense<0.000000e+00> : vector<2x8x64xf32>
    %85 = tpu.matmul %84, %72, %cst_30 {dimension_numbers = #tpu.dot_dimension_numbers<[2], [1], [1], [2], [0, 0, 0, 1, 1, 2], [0], [0]>} : vector<2x8x8xbf16>, vector<2x8x64xbf16>, vector<2x8x64xf32> -> vector<2x8x64xf32>
    "tpu.trace_stop"() : () -> ()
    %86 = vector.shape_cast %85 : vector<2x8x64xf32> to vector<16x64xf32>
    %87 = arith.truncf %86 : vector<16x64xf32> to vector<16x64xbf16>
    %c64 = arith.constant 64 : index
    %c0_31 = arith.constant 0 : index
    %88 = vector.load %arg7[%c64, %c0_31] : memref<128x128xbf16, #tpu.memory_space<vmem>>, vector<64x128xbf16>
    %cst_32 = arith.constant dense<0.000000e+00> : vector<16x128xf32>
    %89 = tpu.matmul %87, %88, %cst_32 {dimension_numbers = #tpu.dot_dimension_numbers<[1], [0], [0], [1], [0, 0, 1, 1], [], []>} : vector<16x64xbf16>, vector<64x128xbf16>, vector<16x128xf32> -> vector<16x128xf32>
    %90 = arith.addf %64, %89 : vector<16x128xf32>
    %91 = arith.addf %5, %90 : vector<16x128xf32>
    %c0_33 = arith.constant 0 : index
    %c0_34 = arith.constant 0 : index
    %92 = vector.load %arg8[%c0_33, %c0_34] : memref<1x128xf32, #tpu.memory_space<vmem>>, vector<1x128xf32>
    %93 = vector.broadcast %92 : vector<1x128xf32> to vector<16x128xf32>
    %94 = arith.addf %91, %93 : vector<16x128xf32>
    %cst_35 = arith.constant dense<0.000000e+00> : vector<16xf32>
    %95 = vector.multi_reduction <add>, %94, %cst_35 [1] : vector<16x128xf32> to vector<16xf32>
    %96 = vector.shape_cast %95 : vector<16xf32> to vector<16x1xf32>
    %cst_36 = arith.constant 1.280000e+02 : f32
    %97 = vector.broadcast %cst_36 : f32 to vector<16x1xf32>
    %98 = arith.divf %96, %97 : vector<16x1xf32>
    %99 = vector.broadcast %98 : vector<16x1xf32> to vector<16x128xf32>
    %100 = arith.subf %94, %99 : vector<16x128xf32>
    %101 = arith.mulf %100, %100 : vector<16x128xf32>
    %cst_37 = arith.constant dense<0.000000e+00> : vector<16xf32>
    %102 = vector.multi_reduction <add>, %101, %cst_37 [1] : vector<16x128xf32> to vector<16xf32>
    %103 = vector.shape_cast %102 : vector<16xf32> to vector<16x1xf32>
    %cst_38 = arith.constant 1.280000e+02 : f32
    %104 = vector.broadcast %cst_38 : f32 to vector<16x1xf32>
    %105 = arith.divf %103, %104 : vector<16x1xf32>
    %106 = vector.broadcast %98 : vector<16x1xf32> to vector<16x128xf32>
    %107 = arith.subf %94, %106 : vector<16x128xf32>
    %cst_39 = arith.constant 9.99999974E-6 : f32
    %108 = vector.broadcast %cst_39 : f32 to vector<16x1xf32>
    %109 = arith.addf %105, %108 : vector<16x1xf32>
    %110 = math.rsqrt %109 : vector<16x1xf32>
    %111 = vector.broadcast %110 : vector<16x1xf32> to vector<16x128xf32>
    %112 = arith.mulf %107, %111 : vector<16x128xf32>
    %c0_40 = arith.constant 0 : index
    %c0_41 = arith.constant 0 : index
    %113 = vector.load %arg9[%c0_40, %c0_41] : memref<1x128xf32, #tpu.memory_space<vmem>>, vector<1x128xf32>
    %114 = vector.broadcast %113 : vector<1x128xf32> to vector<16x128xf32>
    %115 = arith.mulf %112, %114 : vector<16x128xf32>
    %c0_42 = arith.constant 0 : index
    %c0_43 = arith.constant 0 : index
    %116 = vector.load %arg10[%c0_42, %c0_43] : memref<1x128xf32, #tpu.memory_space<vmem>>, vector<1x128xf32>
    %117 = vector.broadcast %116 : vector<1x128xf32> to vector<16x128xf32>
    %118 = arith.addf %115, %117 : vector<16x128xf32>
    %119 = arith.truncf %118 : vector<16x128xf32> to vector<16x128xbf16>
    %c0_44 = arith.constant 0 : index
    %c0_45 = arith.constant 0 : index
    %120 = vector.load %arg11[%c0_44, %c0_45] : memref<128x512xbf16, #tpu.memory_space<vmem>>, vector<128x512xbf16>
    %cst_46 = arith.constant dense<0.000000e+00> : vector<16x512xf32>
    %121 = tpu.matmul %119, %120, %cst_46 {dimension_numbers = #tpu.dot_dimension_numbers<[1], [0], [0], [1], [0, 0, 1, 1], [], []>} : vector<16x128xbf16>, vector<128x512xbf16>, vector<16x512xf32> -> vector<16x512xf32>
    %c0_47 = arith.constant 0 : index
    %c0_48 = arith.constant 0 : index
    %122 = vector.load %arg12[%c0_47, %c0_48] : memref<1x512xf32, #tpu.memory_space<vmem>>, vector<1x512xf32>
    %123 = vector.broadcast %122 : vector<1x512xf32> to vector<16x512xf32>
    %124 = arith.addf %121, %123 : vector<16x512xf32>
    %cst_49 = arith.constant 1.702000e+00 : f32
    %125 = vector.broadcast %cst_49 : f32 to vector<16x512xf32>
    %126 = arith.mulf %125, %124 : vector<16x512xf32>
    %127 = arith.negf %126 : vector<16x512xf32>
    %128 = math.exp %127 : vector<16x512xf32>
    %cst_50 = arith.constant 1.000000e+00 : f32
    %129 = vector.broadcast %cst_50 : f32 to vector<16x512xf32>
    %130 = arith.addf %129, %128 : vector<16x512xf32>
    %131 = arith.divf %129, %130 : vector<16x512xf32>
    %132 = arith.mulf %124, %131 : vector<16x512xf32>
    %133 = arith.truncf %132 : vector<16x512xf32> to vector<16x512xbf16>
    %c0_51 = arith.constant 0 : index
    %c0_52 = arith.constant 0 : index
    %134 = vector.load %arg13[%c0_51, %c0_52] : memref<512x128xbf16, #tpu.memory_space<vmem>>, vector<512x128xbf16>
    %cst_53 = arith.constant dense<0.000000e+00> : vector<16x128xf32>
    %135 = tpu.matmul %133, %134, %cst_53 {dimension_numbers = #tpu.dot_dimension_numbers<[1], [0], [0], [1], [0, 0, 1, 1], [], []>} : vector<16x512xbf16>, vector<512x128xbf16>, vector<16x128xf32> -> vector<16x128xf32>
    %c0_54 = arith.constant 0 : index
    %c0_55 = arith.constant 0 : index
    %136 = vector.load %arg14[%c0_54, %c0_55] : memref<1x128xf32, #tpu.memory_space<vmem>>, vector<1x128xf32>
    %137 = vector.broadcast %136 : vector<1x128xf32> to vector<16x128xf32>
    %138 = arith.addf %135, %137 : vector<16x128xf32>
    %139 = arith.addf %94, %138 : vector<16x128xf32>
    %140 = arith.addf %139, %6 : vector<16x128xf32>
    %141 = vector.shape_cast %140 : vector<16x128xf32> to vector<2x8x128xf32>
    %cst_56 = arith.constant dense<0.000000e+00> : vector<2x128xf32>
    %142 = vector.multi_reduction <add>, %141, %cst_56 [1] : vector<2x8x128xf32> to vector<2x128xf32>
    %cst_57 = arith.constant 8.000000e+00 : f32
    %143 = vector.broadcast %cst_57 : f32 to vector<2x128xf32>
    %144 = arith.divf %142, %143 : vector<2x128xf32>
    %145 = arith.mulf %144, %144 : vector<2x128xf32>
    %cst_58 = arith.constant dense<0.000000e+00> : vector<2xf32>
    %146 = vector.multi_reduction <add>, %145, %cst_58 [1] : vector<2x128xf32> to vector<2xf32>
    %147 = vector.shape_cast %146 : vector<2xf32> to vector<2x1xf32>
    %cst_59 = arith.constant 1.000000e-24 : f32
    %148 = vector.broadcast %cst_59 : f32 to vector<2x1xf32>
    %149 = arith.maximumf %147, %148 : vector<2x1xf32>
    %150 = math.rsqrt %149 : vector<2x1xf32>
    %151 = vector.broadcast %150 : vector<2x1xf32> to vector<2x128xf32>
    %152 = arith.mulf %144, %151 : vector<2x128xf32>
    %c0_60 = arith.constant 0 : index
    %c0_61 = arith.constant 0 : index
    %153 = vector.load %arg15[%c0_60, %c0_61] : memref<2x128xf32, #tpu.memory_space<vmem>>, vector<2x128xf32>
    tpu.vector_store %arg15[%c0_60, %c0_61], %152 {strides = array<i32>} : memref<2x128xf32, #tpu.memory_space<vmem>>, vector<2x128xf32>,
    return
  }
  func.func @transform_0(%arg0: i32) -> (i32, i32, i32) {
    %c0_i32 = arith.constant 0 : i32
    %c0_i32_0 = arith.constant 0 : i32
    %c0_i32_1 = arith.constant 0 : i32
    return %arg0, %c0_i32, %c0_i32_0 : i32, i32, i32
  }
  func.func @transform_1(%arg0: i32) -> (i32, i32) {
    %c0_i32 = arith.constant 0 : i32
    %c0_i32_0 = arith.constant 0 : i32
    %c0_i32_1 = arith.constant 0 : i32
    return %c0_i32, %c0_i32_0 : i32, i32
  }
  func.func @transform_2(%arg0: i32) -> (i32, i32) {
    %c0_i32 = arith.constant 0 : i32
    %c0_i32_0 = arith.constant 0 : i32
    %c0_i32_1 = arith.constant 0 : i32
    return %c0_i32, %c0_i32_0 : i32, i32
  }
  func.func @transform_3(%arg0: i32) -> (i32, i32) {
    %c0_i32 = arith.constant 0 : i32
    %c0_i32_0 = arith.constant 0 : i32
    %c0_i32_1 = arith.constant 0 : i32
    return %c0_i32, %c0_i32_0 : i32, i32
  }
  func.func @transform_4(%arg0: i32) -> (i32, i32) {
    %c0_i32 = arith.constant 0 : i32
    %c0_i32_0 = arith.constant 0 : i32
    %c0_i32_1 = arith.constant 0 : i32
    return %c0_i32, %c0_i32_0 : i32, i32
  }
  func.func @transform_5(%arg0: i32) -> (i32, i32) {
    %c0_i32 = arith.constant 0 : i32
    %c0_i32_0 = arith.constant 0 : i32
    %c0_i32_1 = arith.constant 0 : i32
    return %c0_i32, %c0_i32_0 : i32, i32
  }
  func.func @transform_6(%arg0: i32) -> (i32, i32) {
    %c0_i32 = arith.constant 0 : i32
    %c0_i32_0 = arith.constant 0 : i32
    %c0_i32_1 = arith.constant 0 : i32
    return %c0_i32, %c0_i32_0 : i32, i32
  }
  func.func @transform_7(%arg0: i32) -> (i32, i32) {
    %c0_i32 = arith.constant 0 : i32
    %c0_i32_0 = arith.constant 0 : i32
    %c0_i32_1 = arith.constant 0 : i32
    return %c0_i32, %c0_i32_0 : i32, i32
  }
  func.func @transform_8(%arg0: i32) -> (i32, i32) {
    %c0_i32 = arith.constant 0 : i32
    %c0_i32_0 = arith.constant 0 : i32
    %c0_i32_1 = arith.constant 0 : i32
    return %c0_i32, %c0_i32_0 : i32, i32
  }
  func.func @transform_9(%arg0: i32) -> (i32, i32) {
    %c0_i32 = arith.constant 0 : i32
    %c0_i32_0 = arith.constant 0 : i32
    %c0_i32_1 = arith.constant 0 : i32
    return %c0_i32, %c0_i32_0 : i32, i32
  }
  func.func @transform_10(%arg0: i32) -> (i32, i32) {
    %c0_i32 = arith.constant 0 : i32
    %c0_i32_0 = arith.constant 0 : i32
    %c0_i32_1 = arith.constant 0 : i32
    return %c0_i32, %c0_i32_0 : i32, i32
  }
  func.func @transform_11(%arg0: i32) -> (i32, i32) {
    %c0_i32 = arith.constant 0 : i32
    %c0_i32_0 = arith.constant 0 : i32
    %c0_i32_1 = arith.constant 0 : i32
    return %c0_i32, %c0_i32_0 : i32, i32
  }
  func.func @transform_12(%arg0: i32) -> (i32, i32) {
    %c0_i32 = arith.constant 0 : i32
    %c0_i32_0 = arith.constant 0 : i32
    %c0_i32_1 = arith.constant 0 : i32
    return %c0_i32, %c0_i32_0 : i32, i32
  }
  func.func @transform_13(%arg0: i32) -> (i32, i32) {
    %c0_i32 = arith.constant 0 : i32
    %c0_i32_0 = arith.constant 0 : i32
    %c0_i32_1 = arith.constant 0 : i32
    return %c0_i32, %c0_i32_0 : i32, i32
  }
  func.func @transform_14(%arg0: i32) -> (i32, i32) {
    %c0_i32 = arith.constant 0 : i32
    %c0_i32_0 = arith.constant 0 : i32
    return %arg0, %c0_i32 : i32, i32
  }
}

</mosaic_0001>

<bundles_post_ra>
// kernel: tpu_custom_call.1
= control target key start
LH: loop header
LB: loop body
LE: loop exit
PB: predicated region body
PF: predicated region fallthrough
CT: control target
= control target key end

     0   :  { %19 = vsyncpa [#allocation3], 0  ;;  %s2953_s0 = inlined_call_operand.hbm [shape: f32[2,8,128], index: 0, kind: input, shape index: {}]   ;;  %s2954_s1 = inlined_call_operand.hbm [shape: f32[8,128], index: 1, kind: input, shape index: {}]   ;;  %s2955_s2 = inlined_call_operand.hbm [shape: f32[1,128], index: 2, kind: input, shape index: {}]   ;;  %s2956_s3 = inlined_call_operand.vmem [shape: f32[1,128], index: 3, kind: input, shape index: {}]   ;;  %s2957_s4 = inlined_call_operand.hbm [shape: bf16[128,384], index: 4, kind: input, shape index: {}]   ;;  %s2958_s5 = inlined_call_operand.vmem [shape: f32[1,384], index: 5, kind: input, shape index: {}]   ;;  %s2959_s6 = inlined_call_operand.hbm [shape: bf16[128,128], index: 6, kind: input, shape index: {}]   ;;  %s2960_s7 = inlined_call_operand.vmem [shape: f32[1,128], index: 7, kind: input, shape index: {}]   ;;  %s2961_s8 = inlined_call_operand.vmem [shape: f32[1,128], index: 8, kind: input, shape index: {}]   ;;  %s2962_s9 = inlined_call_operand.vmem [shape: f32[1,128], index: 9, kind: input, shape index: {}]   ;;  %s2963_s10 = inlined_call_operand.hbm [shape: bf16[128,512], index: 10, kind: input, shape index: {}]   ;;  %s2964_s11 = inlined_call_operand.vmem [shape: f32[1,512], index: 11, kind: input, shape index: {}]   ;;  %s2965_s12 = inlined_call_operand.hbm [shape: bf16[512,128], index: 12, kind: input, shape index: {}]   ;;  %s2966_s13 = inlined_call_operand.vmem [shape: f32[1,128], index: 13, kind: input, shape index: {}]   ;;  %s2967_s14 = inlined_call_operand.hbm [shape: f32[2,128], index: 14, kind: output, shape index: {}]  }
   0x1   :  { %20 = vsyncpa [#allocation6], 0 }
   0x2   :  { %21 = vsyncpa [#allocation9], 0 }
   0x3   :  { %22 = vsyncpa [#allocation12], 0 }
   0x4   :  { %23 = vsyncpa [#allocation4], 0  ;;  %s2550_s29 = smov [#allocation5]   ;;  %s2551_s15 = smov [#allocation8]  }
   0x5   :  { %s42_s30 = sshll.u32 %s2550_s29, 4  ;;  %s63_s16 = sshll.u32 %s2551_s15, 4  ;;  %s43_s30 = int_to_ptr.vmem [resolvable:$true] %s42_s30  ;;  %s2644_s16 = int_to_ptr.vmem [resolvable:$true] %s63_s16 }
   0x6   :  { %s2364_s19 = scalar_lea.hbm %s2954_s1, 128 }
   0x7   :  { %p2365_p0 = scmp.ne.s32.totalorder %s2954_s1, %s2364_s19  ;;  %p2368_p1 = scmp.lt.u32.totalorder %s2364_s19, %s2954_s1 }
   0x9   :  { %p2370_p2 = pnand %p2368_p1, %p2365_p0 }
   0xb   :  { %2373 = shalt.err (!%p2370_p2)
}
   0xc   :  { %s2374_s24 = scalar_lea.vmem %s43_s30, 128  ;;  %p2379_p4 = scmp.lt.s32.totalorder %s43_s30, %s43_s30 }
   0xd   :  { %p2375_p3 = scmp.ne.s32.totalorder %s43_s30, %s2374_s24  ;;  %p2380_p5 = scmp.lt.s32.totalorder %s2374_s24, %s2374_s24 }
   0xf   :  { %p2381_p6 = por %p2380_p5, %p2379_p4 }
  0x11   :  { %p2382_p7 = pnand %p2381_p6, %p2375_p3 }
  0x13   :  { %2385 = shalt.err (!%p2382_p7)
}
  0x14   :  { %45 = dma.hbm_to_vmem [thread:$0]  %s2954_s1, 128, %s43_s30, [#allocation6]  }
  0x15   :  { %s2386_s29 = scalar_lea.hbm %s2957_s4, 3072 }
  0x16   :  { %p2387_p8 = scmp.ne.s32.totalorder %s2957_s4, %s2386_s29  ;;  %p2390_p9 = scmp.lt.u32.totalorder %s2386_s29, %s2957_s4 }
  0x18   :  { %p2392_p10 = pnand %p2390_p9, %p2387_p8 }
  0x1a   :  { %2395 = shalt.err (!%p2392_p10)
}
  0x1b   :  { %s2396_s20 = scalar_lea.vmem %s2644_s16, 3072  ;;  %p2401_p12 = scmp.lt.s32.totalorder %s2644_s16, %s2644_s16 }
  0x1c   :  { %p2397_p11 = scmp.ne.s32.totalorder %s2644_s16, %s2396_s20  ;;  %p2402_p13 = scmp.lt.s32.totalorder %s2396_s20, %s2396_s20 }
  0x1e   :  { %p2403_p0 = por %p2402_p13, %p2401_p12 }
  0x20   :  { %p2404_p1 = pnand %p2403_p0, %p2397_p11 }
  0x22   :  { %2407 = shalt.err (!%p2404_p1)
}
  0x23   :  { %s2552_s1 = smov 192   ;;  %s2553_s30 = smov 12  }
  0x24   :  { %69 = dma.hbm_to_vmem [thread:$0]  %s2957_s4, 3072, %s2644_s16, [#allocation9], %s2552_s1, %s2552_s1, %s2553_s30  }
  0x25   :  { %s2554_s23 = smov [#allocation11]   ;;  %s2408_s27 = scalar_lea.hbm %s2963_s10, 4096 }
  0x26   :  { %s95_s24 = sshll.u32 %s2554_s23, 4  ;;  %p2409_p2 = scmp.ne.s32.totalorder %s2963_s10, %s2408_s27  ;;  %s96_s24 = int_to_ptr.vmem [resolvable:$true] %s95_s24 }
  0x27   :  { %p2412_p3 = scmp.lt.u32.totalorder %s2408_s27, %s2963_s10 }
  0x29   :  { %p2414_p4 = pnand %p2412_p3, %p2409_p2 }
  0x2b   :  { %2417 = shalt.err (!%p2414_p4)
}
  0x2c   :  { %s2418_s18 = scalar_lea.vmem %s96_s24, 4096  ;;  %p2423_p6 = scmp.lt.s32.totalorder %s96_s24, %s96_s24 }
  0x2d   :  { %p2419_p5 = scmp.ne.s32.totalorder %s96_s24, %s2418_s18  ;;  %p2424_p7 = scmp.lt.s32.totalorder %s2418_s18, %s2418_s18 }
  0x2f   :  { %p2425_p8 = por %p2424_p7, %p2423_p6 }
  0x31   :  { %p2426_p9 = pnand %p2425_p8, %p2419_p5 }
  0x33   :  { %2429 = shalt.err (!%p2426_p9)
}
  0x34   :  { %s2555_s4 = smov 256   ;;  %s2556_s16 = smov 16  }
  0x35   :  { %101 = dma.hbm_to_vmem [thread:$0]  %s2963_s10, 4096, %s96_s24, [#allocation12], %s2555_s4, %s2555_s4, %s2556_s16  }
  0x36   :  { %s2557_s1 = smov [#allocation2]   ;;  %s2430_s23 = scalar_lea.hbm %s2953_s0, 256 }
  0x37   :  { %s29_s30 = sshll.u32 %s2557_s1, 4  ;;  %p2431_p10 = scmp.ne.s32.totalorder %s2953_s0, %s2430_s23  ;;  %s30_s30 = int_to_ptr.vmem [resolvable:$true] %s29_s30 }
  0x38   :  { %p2434_p11 = scmp.lt.u32.totalorder %s2430_s23, %s2953_s0 }
  0x3a   :  { %p2436_p12 = pnand %p2434_p11, %p2431_p10 }
  0x3c   :  { %2439 = shalt.err (!%p2436_p12)
}
  0x3d   :  { %s2440_s29 = scalar_lea.vmem %s30_s30, 256  ;;  %p2445_p0 = scmp.lt.s32.totalorder %s30_s30, %s30_s30 }
  0x3e   :  { %p2441_p13 = scmp.ne.s32.totalorder %s30_s30, %s2440_s29  ;;  %p2446_p1 = scmp.lt.s32.totalorder %s2440_s29, %s2440_s29 }
  0x40   :  { %p2447_p2 = por %p2446_p1, %p2445_p0 }
  0x42   :  { %p2448_p3 = pnand %p2447_p2, %p2441_p13 }
  0x44   :  { %2451 = shalt.err (!%p2448_p3)
}
  0x45   :  { %s2558_s10 = smov 128   ;;  %s2559_s24 = smov 8  }
  0x46   :  { %35 = dma.hbm_to_vmem [thread:$0]  %s2953_s0, 256, %s30_s30, [#allocation3], %s2558_s10, %s2558_s10, %s2559_s24  }
  0x47   :  { %s2560_s18 = smov [#allocation7]   ;;  %s2561_s16 = smov [#allocation10]  }
  0x48   :  { %s52_s4 = sshll.u32 %s2560_s18, 4  ;;  %s77_s19 = sshll.u32 %s2561_s16, 4  ;;  %s53_s4 = int_to_ptr.vmem [resolvable:$true] %s52_s4  ;;  %s2699_s19 = int_to_ptr.vmem [resolvable:$true] %s77_s19 }
  0x49   :  { %s2452_s21 = scalar_lea.hbm %s2955_s2, 16 }
  0x4a   :  { %p2453_p4 = scmp.ne.s32.totalorder %s2955_s2, %s2452_s21  ;;  %p2456_p5 = scmp.lt.u32.totalorder %s2452_s21, %s2955_s2 }
  0x4c   :  { %p2458_p6 = pnand %p2456_p5, %p2453_p4 }
  0x4e   :  { %2461 = shalt.err (!%p2458_p6)
}
  0x4f   :  { %s2462_s0 = scalar_lea.vmem %s53_s4, 16  ;;  %s2466_s30 = scalar_lea.vmem %s53_s4, 32 }
  0x50   :  { %p2463_p7 = scmp.ne.s32.totalorder %s53_s4, %s2462_s0  ;;  %p2467_p8 = scmp.lt.s32.totalorder %s53_s4, %s53_s4 }
  0x51   :  { %p2468_p9 = scmp.lt.s32.totalorder %s2466_s30, %s2462_s0 }
  0x53   :  { %p2469_p10 = por %p2468_p9, %p2467_p8 }
  0x55   :  { %p2470_p11 = pnand %p2469_p10, %p2463_p7 }
  0x57   :  { %2473 = shalt.err (!%p2470_p11)
}
  0x58   :  { %55 = dma.hbm_to_vmem [thread:$0]  %s2955_s2, 16, %s53_s4, [#allocation6]  }
  0x59   :  { %s2474_s24 = scalar_lea.hbm %s2959_s6, 1024 }
  0x5a   :  { %p2475_p12 = scmp.ne.s32.totalorder %s2959_s6, %s2474_s24  ;;  %p2478_p13 = scmp.lt.u32.totalorder %s2474_s24, %s2959_s6 }
  0x5c   :  { %p2480_p0 = pnand %p2478_p13, %p2475_p12 }
  0x5e   :  { %2483 = shalt.err (!%p2480_p0)
}
  0x5f   :  { %s2484_s20 = scalar_lea.vmem %s2699_s19, 1024  ;;  %p2489_p2 = scmp.lt.s32.totalorder %s2699_s19, %s2699_s19 }
  0x60   :  { %p2485_p1 = scmp.ne.s32.totalorder %s2699_s19, %s2484_s20  ;;  %p2490_p3 = scmp.lt.s32.totalorder %s2484_s20, %s2484_s20 }
  0x62   :  { %p2491_p4 = por %p2490_p3, %p2489_p2 }
  0x64   :  { %p2492_p5 = pnand %p2491_p4, %p2485_p1 }
  0x66   :  { %2495 = shalt.err (!%p2492_p5)
}
  0x67   :  { %s2562_s2 = smov 64   ;;  %s2563_s4 = smov 4  }
  0x68   :  { %83 = dma.hbm_to_vmem [thread:$0]  %s2959_s6, 1024, %s2699_s19, [#allocation9], %s2562_s2, %s2562_s2, %s2563_s4  }
  0x69   :  { %s2564_s22 = smov [#allocation13]   ;;  %s2496_s0 = scalar_lea.hbm %s2965_s12, 4096 }
  0x6a   :  { %s109_s23 = sshll.u32 %s2564_s22, 4  ;;  %p2497_p6 = scmp.ne.s32.totalorder %s2965_s12, %s2496_s0  ;;  %s110_s23 = int_to_ptr.vmem [resolvable:$true] %s109_s23 }
  0x6b   :  { %p2500_p7 = scmp.lt.u32.totalorder %s2496_s0, %s2965_s12 }
  0x6d   :  { %p2502_p8 = pnand %p2500_p7, %p2497_p6 }
  0x6f   :  { %2505 = shalt.err (!%p2502_p8)
}
  0x70   :  { %s2506_s10 = scalar_lea.vmem %s110_s23, 4096  ;;  %p2511_p10 = scmp.lt.s32.totalorder %s110_s23, %s110_s23 }
  0x71   :  { %p2507_p9 = scmp.ne.s32.totalorder %s110_s23, %s2506_s10  ;;  %p2512_p11 = scmp.lt.s32.totalorder %s2506_s10, %s2506_s10 }
  0x73   :  { %p2513_p12 = por %p2512_p11, %p2511_p10 }
  0x75   :  { %p2514_p13 = pnand %p2513_p12, %p2507_p9 }
  0x77   :  { %2517 = shalt.err (!%p2514_p13)
}
  0x78   :  { %115 = dma.hbm_to_vmem [thread:$0]  %s2965_s12, 4096, %s110_s23, [#allocation12], %s2562_s2, %s2562_s2, %s2563_s4  }
  0x79   :  { %2540 = dma.done.wait [#allocation3], 256  }
  0x7a   :  { %2541 = vsyncadd [#allocation3], 4294967040 }
  0x7b   :  { %2542 = dma.done.wait [#allocation6], 144  }
  0x7c   :  { %2543 = vsyncadd [#allocation6], 4294967152 }
  0x7d   :  { %2544 = dma.done.wait [#allocation9], 4096  }
  0x7e   :  { %2545 = vsyncadd [#allocation9], 4294963200 }
  0x7f   :  { %2546 = dma.done.wait [#allocation12], 8192  }
  0x80   :  { %2547 = vsyncadd [#allocation12], 4294959104  ;;  %v140_v0 = vld [vmem:[#allocation2] sm:$0xff]  ;;  %v142_v1 = vld [vmem:[#allocation5] sm:$0xff]  ;;  %v2565_v7 = vmov 0.0   ;;  %v2566_v33 = vmov 0   ;;  %v221_v56 = vlaneseq }
  0x81   :  { %v141_v2 = vld [vmem:[#allocation2 + $0x8] sm:$0xff]  ;;  %v2746_v3 = vadd.f32 %v142_v1, %v140_v0  ;;  %2073 = vmatprep.subr.bf16.mxu1 %v2565_v7  ;;  %v2188_v9 = vld [vmem:[#allocation8 + $0x1c] ss:$12 sps:$4 sm:$0xff]   ;;  %v2190_v18 = vld [vmem:[#allocation8 + $0x18] ss:$12 sps:$4 sm:$0xff]   ;;  %396 = vmatprep.mubr.bf16.mxu0 %v2566_v33  ;;  %vm2567_vm0 = vmmov 0  }
  0x82   :  { %v2749_v4 = vadd.f32 %v142_v1, %v141_v2  ;;  %v2184_v5 = vld [vmem:[#allocation8 + $0x4] ss:$12 sps:$4 sm:$0xff]   ;;  %v2186_v6 = vld [vmem:[#allocation8] ss:$12 sps:$4 sm:$0xff]   ;;  %v2187_v8 = vld [vmem:[#allocation8 + $0x8] ss:$12 sps:$4 sm:$0xff]   ;;  %2089 = vmatprep.mubr.msk.bf16.mxu1 %vm2567_vm0, %v2565_v7 }
  0x83   :  { %145 = vadd.xlane.f32.xlu0 %v2746_v3  ;;  %364 = vmatprep.subr.bf16.mxu0 %v2184_v5  ;;  %v2191_v19 = vld [vmem:[#allocation8 + $0x20] ss:$12 sps:$4 sm:$0xff]   ;;  %v2194_v21 = vld [vmem:[#allocation8 + $0x30] ss:$12 sps:$4 sm:$0xff]   ;;  %v2195_v22 = vld [vmem:[#allocation8 + $0x38] ss:$12 sps:$4 sm:$0xff]  }
  0x84   :  { %365 = vmatpush1.bf16.msra.mxu0 %v2186_v6  ;;  %2074 = vmatpush3.bf16.msra.mxu1 %v2187_v8  ;;  %v2192_v20 = vld [vmem:[#allocation8 + $0x34] ss:$12 sps:$4 sm:$0xff]   ;;  %v2196_v23 = vld [vmem:[#allocation8 + $0x4c] ss:$12 sps:$4 sm:$0xff]   ;;  %v2199_v25 = vld [vmem:[#allocation8 + $0x50] ss:$12 sps:$4 sm:$0xff]  }
  0x85   :  { %366 = vmatprep.subr.bf16.mxu0 %v2188_v9  ;;  %2075 = vmatprep.subr.bf16.mxu1 %v2565_v7  ;;  %v2198_v24 = vld [vmem:[#allocation8 + $0x48] ss:$12 sps:$4 sm:$0xff]   ;;  %v2200_v26 = vld [vmem:[#allocation8 + $0x64] ss:$12 sps:$4 sm:$0xff]   ;;  %v2202_v27 = vld [vmem:[#allocation8 + $0x60] ss:$12 sps:$4 sm:$0xff]  }
  0x86   :  { %v2203_v28 = vld [vmem:[#allocation8 + $0x68] ss:$12 sps:$4 sm:$0xff]   ;;  %v2206_v30 = vld [vmem:[#allocation8 + $0x78] ss:$12 sps:$4 sm:$0xff]   ;;  %v2207_v31 = vld [vmem:[#allocation8 + $0x80] ss:$12 sps:$4 sm:$0xff]  }
  0x87   :  { %147 = vadd.xlane.f32.xlu0 %v2749_v4  ;;  %v2204_v29 = vld [vmem:[#allocation8 + $0x7c] ss:$12 sps:$4 sm:$0xff]   ;;  %v2208_v32 = vld [vmem:[#allocation8 + $0x94] ss:$12 sps:$4 sm:$0xff]   ;;  %v2211_v35 = vld [vmem:[#allocation8 + $0x98] ss:$12 sps:$4 sm:$0xff]  }
  0x88   :  { %367 = vmatpush1.bf16.msra.mxu0 %v2190_v18  ;;  %2076 = vmatpush3.bf16.msra.mxu1 %v2191_v19  ;;  %v2210_v34 = vld [vmem:[#allocation8 + $0x90] ss:$12 sps:$4 sm:$0xff]   ;;  %v2212_v36 = vld [vmem:[#allocation8 + $0xac] ss:$12 sps:$4 sm:$0xff]   ;;  %v2214_v37 = vld [vmem:[#allocation8 + $0xa8] ss:$12 sps:$4 sm:$0xff]  }
  0x89   :  { %2077 = vmatprep.subr.bf16.mxu1 %v2565_v7  ;;  %368 = vmatprep.subr.bf16.mxu0 %v2192_v20  ;;  %v2215_v38 = vld [vmem:[#allocation8 + $0xb0] ss:$12 sps:$4 sm:$0xff]   ;;  %v1875_v51 = vld [vmem:[%s2956_s3] ss:$0 sm:$0xff]  ;;  %v2784_v57 = vshrl.u32 %v221_v56, 7  ;;  %vm456_vm1 = vcmask 523264  }
  0x8a   :  { %v1874_v47 = vld [vmem:[#allocation7] ss:$0 sm:$0xff]  ;;  %v219_v59 = vld [vmem:[%s2958_s5] sm:$0x7]  ;;  %vm577_vm2 = vcmask 1043456   ;;  %vm549_vm3 = vcmask 64512  }
  0x8b   :  { %v227_v58 = vsub.s32 1, %v2784_v57  ;;  %v223_v60 = vsub.s32 0, %v2784_v57  ;;  %v231_v61 = vsub.s32 2, %v2784_v57  ;;  %vm1835_vm4 = vcmask 1041409  }
  0x8c   :  { %369 = vmatpush1.bf16.msra.mxu0 %v2194_v21  ;;  %2078 = vmatpush3.bf16.msra.mxu1 %v2195_v22  ;;  %vm1838_vm5 = vcmask 1041408  }
  0x8d   :  { %2079 = vmatprep.subr.bf16.mxu1 %v2565_v7  ;;  %370 = vmatprep.subr.bf16.mxu0 %v2196_v23  ;;  %v228_v62 = vrot.slane %v219_v59, %v227_v58  ;;  %v224_v63 = vrot.slane %v219_v59, %v223_v60  ;;  %v232_v6 = vrot.slane %v219_v59, %v231_v61 }
  0x90   :  { %371 = vmatpush1.bf16.msra.mxu0 %v2198_v24  ;;  %2080 = vmatpush3.bf16.msra.mxu1 %v2199_v25 }
  0x91   :  { %2081 = vmatprep.subr.bf16.mxu1 %v2565_v7  ;;  %372 = vmatprep.subr.bf16.mxu0 %v2200_v26 }
  0x94   :  { %373 = vmatpush1.bf16.msra.mxu0 %v2202_v27  ;;  %2082 = vmatpush3.bf16.msra.mxu1 %v2203_v28 }
  0x95   :  { %374 = vmatprep.subr.bf16.mxu0 %v2204_v29  ;;  %2083 = vmatprep.subr.bf16.mxu1 %v2565_v7 }
  0x98   :  { %375 = vmatpush1.bf16.msra.mxu0 %v2206_v30  ;;  %2084 = vmatpush3.bf16.msra.mxu1 %v2207_v31 }
  0x99   :  { %376 = vmatprep.subr.bf16.mxu0 %v2208_v32  ;;  %2085 = vmatprep.subr.bf16.mxu1 %v2565_v7 }
  0x9c   :  { %377 = vmatpush1.bf16.msra.mxu0 %v2210_v34  ;;  %2086 = vmatpush3.bf16.msra.mxu1 %v2211_v35 }
  0x9d   :  { %378 = vmatprep.subr.bf16.mxu0 %v2212_v36  ;;  %2087 = vmatprep.subr.bf16.mxu1 %v2565_v7 }
  0xa0   :  { %379 = vmatpush1.bf16.msra.mxu0 %v2214_v37  ;;  %2088 = vmatpush3.bf16.msra.mxu1 %v2215_v38 }
  0xa1   :  { %2093 = vmatprep.subr.bf16.mxu0 %v2565_v7  ;;  %2099 = vmatprep.subr.bf16.mxu1 %v2565_v7 }
 0x110   :  { %v146_v10 = vpop.xlane.xlu0 %145 }
 0x111   :  { %v150_v11 = vmul.f32 0.0078125, %v146_v10 }
 0x113   :  { %v2755_v12 = vsub.f32 %v2746_v3, %v150_v11 }
 0x114   :  { %v148_v13 = vpop.xlane.xlu0 %147 }
 0x115   :  { %v151_v14 = vmul.f32 0.0078125, %v148_v13  ;;  %v154_v15 = vmul.f32 %v2755_v12, %v2755_v12 }
 0x117   :  { %v2760_v16 = vsub.f32 %v2749_v4, %v151_v14  ;;  %156 = vadd.xlane.f32.xlu1 %v154_v15 }
 0x119   :  { %v155_v17 = vmul.f32 %v2760_v16, %v2760_v16 }
 0x11b   :  { %158 = vadd.xlane.f32.xlu1 %v155_v17 }
 0x1a4   :  { %v157_v39 = vpop.xlane.xlu1 %156 }
 0x1a5   :  { %v160_v40 = vmul.f32 0.0078125, %v157_v39 }
 0x1a7   :  { %v162_v41 = vadd.f32 1e-05, %v160_v40 }
 0x1a8   :  { %v159_v42 = vpop.xlane.xlu1 %158 }
 0x1a9   :  { %2304 = vrsqrt.f32 %v162_v41  ;;  %v161_v43 = vmul.f32 0.0078125, %v159_v42 }
 0x1ab   :  { %v163_v44 = vadd.f32 1e-05, %v161_v43 }
 0x1ad   :  { %2306 = vrsqrt.f32 %v163_v44 }
 0x1b3   :  { %v2305_v45 = vpop.eup %2304 }
 0x1b4   :  { %v166_v46 = vmul.f32 %v2305_v45, %v2755_v12 }
 0x1b6   :  { %v175_v50 = vmul.f32 %v1874_v47, %v166_v46 }
 0x1b7   :  { %v2307_v48 = vpop.eup %2306 }
 0x1b8   :  { %v167_v49 = vmul.f32 %v2307_v48, %v2760_v16  ;;  %v184_v53 = vadd.f32 %v1875_v51, %v175_v50 }
 0x1ba   :  { %v176_v52 = vmul.f32 %v1874_v47, %v167_v49 }
 0x1bc   :  { %v185_v54 = vadd.f32 %v1875_v51, %v176_v52 }
 0x1be   :  { %v186_v55 = vpack.c.bf16 %v185_v54, %v184_v53 }
 0x1c0   :  { %397 = vmatmul.mubr.bf16.vlgmr.msra.gmra.mrb[0].mxu0 %v186_v55  ;;  %2090 = vmatmul.mubr.bf16.vlgmr.msra.gmra.mrb[0].mxu1 %v186_v55 }
 0x1c1   :  { %2095 = vmatprep.mubr.msk.bf16.mxu0 %vm2567_vm0, %v2565_v7  ;;  %2101 = vmatprep.mubr.msk.bf16.mxu1 %vm2567_vm0, %v2565_v7 }
 0x293   :  { %v398_v0 = vpop.f32.mrb[0].mxu0  ;;  %v441_v1 = vpop.f32.mrb[0].mxu1 }
 0x294   :  { %v400_v2 = vpop.f32.mrb[1].mxu0  ;;  %v2091_v5 = vpop.f32.mrb[1].mxu1  ;;  %v399_v13 = vadd.f32 %v398_v0, %v224_v63  ;;  %v442_v16 = vadd.f32 %v441_v1, %v232_v6 }
 0x295   :  { %v401_v8 = vadd.f32 %v400_v2, %v228_v62  ;;  %v402_v9 = vpop.f32.mrb[2].mxu0  ;;  %v444_v10 = vpop.f32.mrb[2].mxu1 }
 0x296   :  { %v404_v11 = vpop.f32.mrb[3].mxu0  ;;  %v2092_v12 = vpop.f32.mrb[3].mxu1  ;;  %v403_v18 = vadd.f32 %v402_v9, %v224_v63  ;;  %v448_v20 = vmul.f32 0.125, %v399_v13  ;;  %v445_v21 = vadd.f32 %v444_v10, %v232_v6  ;;  %v2801_v23 = vpack.c.bf16 %v442_v16, %v442_v16 }
 0x297   :  { %v452_v14 = vpack.c.bf16 %v401_v8, %v401_v8  ;;  %v405_v15 = vadd.f32 %v404_v11, %v228_v62 }
 0x298   :  { %v449_v24 = vmul.f32 0.125, %v403_v18  ;;  %v450_v25 = vpack.c.bf16 %v448_v20, %v448_v20  ;;  %v2804_v26 = vpack.c.bf16 %v445_v21, %v445_v21  ;;  %v579_v27 = vsel %vm577_vm2, %v2801_v23, 0 }
 0x299   :  { %v461_v17 = vsel %vm456_vm1, %v452_v14, 0  ;;  %v453_v19 = vpack.c.bf16 %v405_v15, %v405_v15 }
 0x29a   :  { %2094 = vmatpush3.bf16.xpose.msra.mxu0 %v461_v17  ;;  %v451_v28 = vpack.c.bf16 %v449_v24, %v449_v24  ;;  %v625_v29 = vsel %vm577_vm2, %v2804_v26, 0 }
 0x29b   :  { %v507_v22 = vsel %vm456_vm1, %v453_v19, 0  ;;  %2105 = vmatprep.subr.bf16.mxu0 %v2565_v7 }
 0x29c   :  { %2100 = vmatpush3.bf16.xpose.msra.mxu1 %v507_v22 }
 0x29d   :  { %2111 = vmatprep.subr.bf16.mxu1 %v2565_v7 }
 0x2a1   :  { %2096 = vmatmul.mubr.msk.bf16.vlgmr.msra.gmra.mrb[4].mxu0 %vm456_vm1, %v450_v25 }
 0x2a2   :  { %2106 = vmatpush3.bf16.msra.mxu0 %v579_v27  ;;  %2107 = vmatprep.mubr.msk.bf16.mxu0 %vm2567_vm0, %v2565_v7 }
 0x2a3   :  { %2102 = vmatmul.mubr.msk.bf16.vlgmr.msra.gmra.mrb[4].mxu1 %vm456_vm1, %v451_v28  ;;  %2117 = vmatprep.subr.bf16.mxu0 %v2565_v7 }
 0x2a4   :  { %2112 = vmatpush3.bf16.msra.mxu1 %v625_v29  ;;  %2113 = vmatprep.mubr.msk.bf16.mxu1 %vm2567_vm0, %v2565_v7 }
 0x2a5   :  { %2123 = vmatprep.subr.bf16.mxu1 %v2565_v7 }
 0x374   :  { %v497_v30 = vpop.f32.mrb[4].mxu0 }
 0x375   :  { %v2097_v31 = vpop.f32.mrb[5].mxu0  ;;  %v550_v32 = vsel %vm549_vm3, %v497_v30, -inf }
 0x376   :  { %v543_v34 = vpop.f32.mrb[4].mxu1  ;;  %551 = vmax.xlane.f32.xlu0 %v550_v32  ;;  %v500_v35 = vpop.f32.mrb[6].mxu0 }
 0x377   :  { %v2098_v36 = vpop.f32.mrb[7].mxu0  ;;  %v2103_v37 = vpop.f32.mrb[5].mxu1  ;;  %v553_v38 = vsel %vm549_vm3, %v543_v34, -inf }
 0x378   :  { %554 = vmax.xlane.f32.xlu1 %v553_v38  ;;  %v546_v39 = vpop.f32.mrb[6].mxu1 }
 0x379   :  { %v2104_v40 = vpop.f32.mrb[7].mxu1 }
 0x389   :  { %732 = vrot.lane.b32.xlu1 %v453_v19, %s2562_s2 }
 0x403   :  { %v552_v41 = vpop.xlane.xlu0 %551 }
 0x404   :  { %v556_v42 = vsub.f32 %v497_v30, %v552_v41 }
 0x405   :  { %v555_v43 = vpop.xlane.xlu1 %554 }
 0x406   :  { %v558_v44 = vmul.f32 1.442695, %v556_v42  ;;  %v557_v45 = vsub.f32 %v543_v34, %v555_v43 }
 0x408   :  { %2308 = vpow2.f32 %v558_v44  ;;  %v560_v46 = vmul.f32 1.442695, %v557_v45 }
 0x409   :  { %v733_v51 = vpop.permute.xlu1 %732 }
 0x40a   :  { %2310 = vpow2.f32 %v560_v46  ;;  %v738_v2 = vsel %vm456_vm1, %v733_v51, 0  ;;  %v2216_v51 = vld [vmem:[#allocation10] sm:$0xff]  }
 0x412   :  { %v2309_v47 = vpop.eup %2308 }
 0x413   :  { %v562_v48 = vsel %vm549_vm3, %v2309_v47, 0.0 }
 0x414   :  { %v2311_v49 = vpop.eup %2310  ;;  %563 = vadd.xlane.f32.xlu0 %v562_v48 }
 0x415   :  { %v565_v50 = vsel %vm549_vm3, %v2311_v49, 0.0 }
 0x416   :  { %566 = vadd.xlane.f32.xlu1 %v565_v50 }
 0x427   :  { %677 = vrot.lane.b32.xlu1 %v450_v25, %s2562_s2 }
 0x42a   :  { %680 = vrot.lane.b32.xlu0 %v452_v14, %s2562_s2 }
 0x42b   :  { %729 = vrot.lane.b32.xlu1 %v451_v28, %s2562_s2 }
 0x4a1   :  { %v564_v52 = vpop.xlane.xlu0 %563 }
 0x4a2   :  { %2312 = vrcp.f32 %v564_v52  ;;  %v2221_v52 = vld [vmem:[#allocation10 + $0x28] sm:$0xff]  }
 0x4a3   :  { %v567_v53 = vpop.xlane.xlu1 %566 }
 0x4a4   :  { %2314 = vrcp.f32 %v567_v53  ;;  %v2217_v53 = vld [vmem:[#allocation10 + $0x8] sm:$0xff]  }
 0x4a5   :  { %v681_v59 = vpop.permute.xlu0 %680 }
 0x4a6   :  { %v686_v0 = vsel %vm456_vm1, %v681_v59, 0  ;;  %v2223_v59 = vld [vmem:[#allocation10 + $0x38] sm:$0xff]  }
 0x4a7   :  { %v678_v5 = vpop.permute.xlu1 %677 }
 0x4ab   :  { %v730_v6 = vpop.permute.xlu1 %729 }
 0x4ac   :  { %v2313_v54 = vpop.eup %2312 }
 0x4ad   :  { %v570_v55 = vmul.f32 %v2313_v54, %v2309_v47  ;;  %v2220_v47 = vld [vmem:[#allocation10 + $0x20] sm:$0xff]   ;;  %v2218_v54 = vld [vmem:[#allocation10 + $0x10] sm:$0xff]  }
 0x4ae   :  { %v2315_v56 = vpop.eup %2314 }
 0x4af   :  { %v571_v62 = vmul.f32 %v2315_v56, %v2311_v49  ;;  %v572_v63 = vpack.c.bf16 %v570_v55, %v570_v55  ;;  %v2219_v55 = vld [vmem:[#allocation10 + $0x18] sm:$0xff]   ;;  %v2222_v56 = vld [vmem:[#allocation10 + $0x30] sm:$0xff]  }
 0x4b1   :  { %2108 = vmatmul.mubr.msk.bf16.vlgmr.msra.gmra.mrb[8].mxu0 %vm549_vm3, %v572_v63  ;;  %v573_v1 = vpack.c.bf16 %v571_v62, %v571_v62 }
 0x4b2   :  { %2118 = vmatpush3.bf16.xpose.msra.mxu0 %v686_v0  ;;  %2119 = vmatprep.mubr.msk.bf16.mxu0 %vm2567_vm0, %v2565_v7 }
 0x4b3   :  { %2114 = vmatmul.mubr.msk.bf16.vlgmr.msra.gmra.mrb[8].mxu1 %vm549_vm3, %v573_v1  ;;  %2129 = vmatprep.subr.bf16.mxu0 %v2565_v7 }
 0x4b4   :  { %2124 = vmatpush3.bf16.xpose.msra.mxu1 %v738_v2  ;;  %2125 = vmatprep.mubr.msk.bf16.mxu1 %vm2567_vm0, %v2565_v7 }
 0x4b5   :  { %2135 = vmatprep.subr.bf16.mxu1 %v2565_v7 }
 0x4b9   :  { %2120 = vmatmul.mubr.msk.bf16.vlgmr.msra.gmra.mrb[12].mxu0 %vm456_vm1, %v678_v5 }
 0x4ba   :  { %2131 = vmatprep.mubr.msk.bf16.mxu0 %vm2567_vm0, %v2565_v7 }
 0x4bb   :  { %2126 = vmatmul.mubr.msk.bf16.vlgmr.msra.gmra.mrb[12].mxu1 %vm456_vm1, %v730_v6 }
 0x4bc   :  { %2137 = vmatprep.mubr.msk.bf16.mxu1 %vm2567_vm0, %v2565_v7 }
 0x584   :  { %v2842_v8 = vpop.f32.mrb[8].mxu0 }
 0x585   :  { %v2109_v9 = vpop.f32.mrb[9].mxu0 }
 0x586   :  { %v618_v10 = vpop.f32.mrb[10].mxu0  ;;  %v2844_v11 = vpop.f32.mrb[8].mxu1 }
 0x587   :  { %v667_v12 = vpack.c.bf16 %v2844_v11, %v2842_v8  ;;  %v2110_v13 = vpop.f32.mrb[11].mxu0  ;;  %v2115_v14 = vpop.f32.mrb[9].mxu1 }
 0x588   :  { %v664_v15 = vpop.f32.mrb[10].mxu1 }
 0x589   :  { %v2116_v16 = vpop.f32.mrb[11].mxu1 }
 0x58c   :  { %v722_v17 = vpop.f32.mrb[12].mxu0 }
 0x58d   :  { %v2121_v18 = vpop.f32.mrb[13].mxu0  ;;  %v780_v19 = vsel %vm549_vm3, %v722_v17, -inf }
 0x58e   :  { %v774_v20 = vpop.f32.mrb[12].mxu1  ;;  %781 = vmax.xlane.f32.xlu0 %v780_v19  ;;  %v725_v21 = vpop.f32.mrb[14].mxu0 }
 0x58f   :  { %v2122_v22 = vpop.f32.mrb[15].mxu0  ;;  %v2127_v24 = vpop.f32.mrb[13].mxu1  ;;  %v783_v25 = vsel %vm549_vm3, %v774_v20, -inf }
 0x590   :  { %784 = vmax.xlane.f32.xlu1 %v783_v25  ;;  %v777_v27 = vpop.f32.mrb[14].mxu1  ;;  %v2224_v24 = vld [vmem:[#allocation11] ss:$16 sps:$4 sm:$0xff]   ;;  %v2226_v25 = vld [vmem:[#allocation11 + $0x4] ss:$16 sps:$4 sm:$0xff]  }
 0x591   :  { %v2128_v28 = vpop.f32.mrb[15].mxu1  ;;  %v2227_v27 = vld [vmem:[#allocation11 + $0x8] ss:$16 sps:$4 sm:$0xff]  }
 0x592   :  { %v2229_v28 = vld [vmem:[#allocation11 + $0xc] ss:$16 sps:$4 sm:$0xff]  }
 0x5a1   :  { %854 = vrot.lane.b32.xlu1 %v2804_v26, %s2562_s2 }
 0x61b   :  { %v782_v29 = vpop.xlane.xlu0 %781 }
 0x61c   :  { %v786_v30 = vsub.f32 %v722_v17, %v782_v29  ;;  %v1918_v17 = vld [vmem:[%s2960_s7] ss:$0 sm:$0xff] }
 0x61d   :  { %v785_v31 = vpop.xlane.xlu1 %784  ;;  %v2232_v29 = vld [vmem:[#allocation11 + $0x24] ss:$16 sps:$4 sm:$0xff]  }
 0x61e   :  { %v788_v32 = vmul.f32 1.442695, %v786_v30  ;;  %v787_v34 = vsub.f32 %v774_v20, %v785_v31  ;;  %v2235_v30 = vld [vmem:[#allocation11 + $0x2c] ss:$16 sps:$4 sm:$0xff]  }
 0x620   :  { %2316 = vpow2.f32 %v788_v32  ;;  %v790_v35 = vmul.f32 1.442695, %v787_v34 }
 0x621   :  { %v855_v36 = vpop.permute.xlu1 %854 }
 0x622   :  { %2318 = vpow2.f32 %v790_v35  ;;  %v860_v37 = vsel %vm577_vm2, %v855_v36, 0 }
 0x623   :  { %2136 = vmatpush3.bf16.msra.mxu1 %v860_v37 }
 0x624   :  { %2153 = vmatprep.subr.bf16.mxu1 %v2565_v7 }
 0x62a   :  { %v2317_v38 = vpop.eup %2316 }
 0x62b   :  { %v792_v39 = vsel %vm549_vm3, %v2317_v38, 0.0 }
 0x62c   :  { %v2319_v40 = vpop.eup %2318  ;;  %793 = vadd.xlane.f32.xlu0 %v792_v39 }
 0x62d   :  { %v795_v26 = vsel %vm549_vm3, %v2319_v40, 0.0 }
 0x630   :  { %796 = vadd.xlane.f32.xlu0 %v795_v26  ;;  %v2241_v26 = vld [vmem:[#allocation11 + $0x4c] ss:$16 sps:$4 sm:$0xff]  }
 0x646   :  { %805 = vrot.lane.b32.xlu0 %v2801_v23, %s2562_s2 }
 0x6b9   :  { %v794_v41 = vpop.xlane.xlu0 %793 }
 0x6ba   :  { %2320 = vrcp.f32 %v794_v41  ;;  %v2236_v41 = vld [vmem:[#allocation11 + $0x40] ss:$16 sps:$4 sm:$0xff]  }
 0x6bd   :  { %v797_v42 = vpop.xlane.xlu0 %796 }
 0x6be   :  { %2322 = vrcp.f32 %v797_v42  ;;  %v2239_v42 = vld [vmem:[#allocation11 + $0x48] ss:$16 sps:$4 sm:$0xff]  }
 0x6c1   :  { %v806_v43 = vpop.permute.xlu0 %805 }
 0x6c2   :  { %v811_v44 = vsel %vm577_vm2, %v806_v43, 0  ;;  %v2244_v43 = vld [vmem:[#allocation11 + $0x64] ss:$16 sps:$4 sm:$0xff]  }
 0x6c3   :  { %2130 = vmatpush3.bf16.msra.mxu0 %v811_v44  ;;  %v2247_v44 = vld [vmem:[#allocation11 + $0x6c] ss:$16 sps:$4 sm:$0xff]  }
 0x6c4   :  { %v2321_v45 = vpop.eup %2320  ;;  %2141 = vmatprep.subr.bf16.mxu0 %v2565_v7 }
 0x6c5   :  { %v800_v46 = vmul.f32 %v2321_v45, %v2317_v38  ;;  %v2242_v45 = vld [vmem:[#allocation11 + $0x60] ss:$16 sps:$4 sm:$0xff]  }
 0x6c7   :  { %v802_v48 = vpack.c.bf16 %v800_v46, %v800_v46  ;;  %v2245_v46 = vld [vmem:[#allocation11 + $0x68] ss:$16 sps:$4 sm:$0xff]  }
 0x6c8   :  { %v2323_v49 = vpop.eup %2322 }
 0x6c9   :  { %v801_v50 = vmul.f32 %v2323_v49, %v2319_v40  ;;  %2132 = vmatmul.mubr.msk.bf16.vlgmr.msra.gmra.mrb[16].mxu0 %vm549_vm3, %v802_v48  ;;  %v2238_v40 = vld [vmem:[#allocation11 + $0x44] ss:$16 sps:$4 sm:$0xff]   ;;  %v2253_v48 = vld [vmem:[#allocation11 + $0x8c] ss:$16 sps:$4 sm:$0xff]   ;;  %v2248_v49 = vld [vmem:[#allocation11 + $0x80] ss:$16 sps:$4 sm:$0xff]  }
 0x6ca   :  { %2142 = vmatpush3.bf16.msra.mxu0 %v2220_v47  ;;  %2149 = vmatprep.mubr.msk.bf16.mxu0 %vm2567_vm0, %v2565_v7  ;;  %v2250_v47 = vld [vmem:[#allocation11 + $0x84] ss:$16 sps:$4 sm:$0xff]  }
 0x6cb   :  { %v803_v23 = vpack.c.bf16 %v801_v50, %v801_v50  ;;  %2143 = vmatprep.subr.bf16.mxu0 %v2565_v7  ;;  %v2251_v50 = vld [vmem:[#allocation11 + $0x88] ss:$16 sps:$4 sm:$0xff]  }
 0x6cd   :  { %2138 = vmatmul.mubr.msk.bf16.vlgmr.msra.gmra.mrb[16].mxu1 %vm549_vm3, %v803_v23  ;;  %v2259_v23 = vld [vmem:[#allocation11 + $0xac] ss:$16 sps:$4 sm:$0xff]  }
 0x6ce   :  { %2154 = vmatpush3.bf16.msra.mxu1 %v2216_v51  ;;  %2161 = vmatprep.mubr.msk.bf16.mxu1 %vm2567_vm0, %v2565_v7  ;;  %v2256_v51 = vld [vmem:[#allocation11 + $0xa4] ss:$16 sps:$4 sm:$0xff]  }
 0x6cf   :  { %2155 = vmatprep.subr.bf16.mxu1 %v2565_v7  ;;  %2144 = vmatpush3.bf16.msra.mxu0 %v2221_v52  ;;  %v2254_v52 = vld [vmem:[#allocation11 + $0xa0] ss:$16 sps:$4 sm:$0xff]  }
 0x6d0   :  { %2145 = vmatprep.subr.bf16.mxu0 %v2565_v7 }
 0x6d2   :  { %2156 = vmatpush3.bf16.msra.mxu1 %v2217_v53  ;;  %v2257_v53 = vld [vmem:[#allocation11 + $0xa8] ss:$16 sps:$4 sm:$0xff]  }
 0x6d3   :  { %2157 = vmatprep.subr.bf16.mxu1 %v2565_v7  ;;  %2146 = vmatpush3.bf16.msra.mxu0 %v2222_v56  ;;  %v2260_v56 = vld [vmem:[#allocation11 + $0xc0] ss:$16 sps:$4 sm:$0xff]  }
 0x6d4   :  { %2147 = vmatprep.subr.bf16.mxu0 %v2565_v7 }
 0x6d6   :  { %2158 = vmatpush3.bf16.msra.mxu1 %v2218_v54  ;;  %v2262_v54 = vld [vmem:[#allocation11 + $0xc4] ss:$16 sps:$4 sm:$0xff]  }
 0x6d7   :  { %2159 = vmatprep.subr.bf16.mxu1 %v2565_v7  ;;  %2148 = vmatpush3.bf16.msra.mxu0 %v2223_v59  ;;  %v2263_v59 = vld [vmem:[#allocation11 + $0xc8] ss:$16 sps:$4 sm:$0xff]  }
 0x6d8   :  { %1313 = vmatprep.subr.bf16.mxu0 %v2226_v25  ;;  %v2274_v25 = vld [vmem:[#allocation13] sm:$0xff]  }
 0x6da   :  { %2160 = vmatpush3.bf16.msra.mxu1 %v2219_v55  ;;  %v2265_v55 = vld [vmem:[#allocation11 + $0xcc] ss:$16 sps:$4 sm:$0xff]  }
 0x6db   :  { %1356 = vmatprep.subr.bf16.mxu1 %v2229_v28  ;;  %v2276_v28 = vld [vmem:[#allocation13 + $0x48] sm:$0xff]  }
 0x6dd   :  { %2162 = vmatmul.mubr.msk.bf16.vlgmr.msra.gmra.mrb[20].mxu1 %vm456_vm1, %v667_v12 }
 0x6de   :  { %1388 = vmatprep.mubr.bf16.mxu1 %v2566_v33  ;;  %1357 = vmatpush1.bf16.msra.mxu1 %v2227_v27  ;;  %v2275_v27 = vld [vmem:[#allocation13 + $0x80] sm:$0xff]  }
 0x6df   :  { %1358 = vmatprep.subr.bf16.mxu1 %v2235_v30  ;;  %v2278_v30 = vld [vmem:[#allocation13 + $0x8] sm:$0xff]  }
 0x79c   :  { %v847_v62 = vpop.f32.mrb[16].mxu0 }
 0x79d   :  { %v2133_v63 = vpop.f32.mrb[17].mxu0 }
 0x79e   :  { %v850_v0 = vpop.f32.mrb[18].mxu0  ;;  %v2271_v63 = vld [vmem:[#allocation11 + $0xec] ss:$16 sps:$4 sm:$0xff]  }
 0x79f   :  { %v2134_v1 = vpop.f32.mrb[19].mxu0  ;;  %v2266_v0 = vld [vmem:[#allocation11 + $0xe0] ss:$16 sps:$4 sm:$0xff]  }
 0x7a0   :  { %v896_v2 = vpop.f32.mrb[16].mxu1  ;;  %v2269_v1 = vld [vmem:[#allocation11 + $0xe8] ss:$16 sps:$4 sm:$0xff]  }
 0x7a1   :  { %v902_v5 = vpack.c.bf16 %v896_v2, %v847_v62  ;;  %v2139_v6 = vpop.f32.mrb[17].mxu1  ;;  %v2268_v62 = vld [vmem:[#allocation11 + $0xe4] ss:$16 sps:$4 sm:$0xff]  }
 0x7a2   :  { %v899_v9 = vpop.f32.mrb[18].mxu1 }
 0x7a3   :  { %v2140_v10 = vpop.f32.mrb[19].mxu1  ;;  %2150 = vmatmul.mubr.msk.bf16.vlgmr.msra.gmra.mrb[20].mxu0 %vm456_vm1, %v902_v5 }
 0x7a4   :  { %1345 = vmatprep.mubr.bf16.mxu0 %v2566_v33  ;;  %1314 = vmatpush1.bf16.msra.mxu0 %v2224_v24  ;;  %v2273_v24 = vld [vmem:[#allocation13 + $0xc0] sm:$0xff]  }
 0x7a5   :  { %1315 = vmatprep.subr.bf16.mxu0 %v2232_v29  ;;  %v2277_v29 = vld [vmem:[#allocation13 + $0xc8] sm:$0xff]  }
 0x7b0   :  { %v1040_v8 = vpop.f32.mrb[20].mxu1 }
 0x7b1   :  { %v2163_v11 = vpop.f32.mrb[21].mxu1 }
 0x7b2   :  { %v1043_v12 = vpop.f32.mrb[22].mxu1 }
 0x7b3   :  { %v2164_v13 = vpop.f32.mrb[23].mxu1 }
 0x876   :  { %v972_v7 = vpop.f32.mrb[20].mxu0 }
 0x877   :  { %v1041_v14 = vadd.f32 %v1040_v8, %v972_v7  ;;  %v2151_v15 = vpop.f32.mrb[21].mxu0 }
 0x878   :  { %v975_v16 = vpop.f32.mrb[22].mxu0 }
 0x879   :  { %v1047_v18 = vadd.f32 %v1041_v14, %v2746_v3  ;;  %v1044_v19 = vadd.f32 %v1043_v12, %v975_v16  ;;  %v2152_v20 = vpop.f32.mrb[23].mxu0  ;;  %v2230_v3 = vld [vmem:[#allocation11 + $0x20] ss:$16 sps:$4 sm:$0xff]   ;;  %v1919_v12 = vld [vmem:[%s2961_s8] ss:$0 sm:$0xff] }
 0x87a   :  { %1316 = vmatpush1.bf16.msra.mxu0 %v2230_v3  ;;  %v1920_v16 = vld [vmem:[%s2962_s9] ss:$0 sm:$0xff]  ;;  %v2279_v3 = vld [vmem:[#allocation13 + $0x88] sm:$0xff]  }
 0x87b   :  { %v1048_v21 = vadd.f32 %v1044_v19, %v2749_v4  ;;  %v2884_v22 = vadd.f32 %v1918_v17, %v1047_v18  ;;  %v2233_v4 = vld [vmem:[#allocation11 + $0x28] ss:$16 sps:$4 sm:$0xff]   ;;  %1317 = vmatprep.subr.bf16.mxu0 %v2238_v40  ;;  %v2289_v40 = vld [vmem:[#allocation13 + $0xe0] sm:$0xff]  }
 0x87c   :  { %1359 = vmatpush1.bf16.msra.mxu1 %v2233_v4  ;;  %v2280_v4 = vld [vmem:[#allocation13 + $0x50] sm:$0xff]  }
 0x87d   :  { %1058 = vadd.xlane.f32.xlu1 %v2884_v22  ;;  %v2887_v33 = vadd.f32 %v1918_v17, %v1048_v21  ;;  %1360 = vmatprep.subr.bf16.mxu1 %v2241_v26  ;;  %v2272_v21 = vld [vmem:[#allocation13 + $0x40] sm:$0xff]  }
 0x87e   :  { %1318 = vmatpush1.bf16.msra.mxu0 %v2236_v41  ;;  %v2290_v26 = vld [vmem:[#allocation13 + $0x20] sm:$0xff]  }
 0x87f   :  { %1060 = vadd.xlane.f32.xlu0 %v2887_v33  ;;  %1319 = vmatprep.subr.bf16.mxu0 %v2244_v43  ;;  %v2291_v41 = vld [vmem:[#allocation13 + $0xa0] sm:$0xff]   ;;  %v2293_v43 = vld [vmem:[#allocation13 + $0xe8] sm:$0xff]  }
 0x880   :  { %1361 = vmatpush1.bf16.msra.mxu1 %v2239_v42  ;;  %v2292_v42 = vld [vmem:[#allocation13 + $0x68] sm:$0xff]  }
 0x881   :  { %1362 = vmatprep.subr.bf16.mxu1 %v2247_v44  ;;  %v2294_v44 = vld [vmem:[#allocation13 + $0x28] sm:$0xff]  }
 0x882   :  { %1320 = vmatpush1.bf16.msra.mxu0 %v2242_v45  ;;  %v2295_v45 = vld [vmem:[#allocation13 + $0xa8] sm:$0xff]  }
 0x883   :  { %1321 = vmatprep.subr.bf16.mxu0 %v2250_v47  ;;  %v2297_v47 = vld [vmem:[#allocation13 + $0xf0] sm:$0xff]  }
 0x884   :  { %1363 = vmatpush1.bf16.msra.mxu1 %v2245_v46  ;;  %v2296_v46 = vld [vmem:[#allocation13 + $0x70] sm:$0xff]  }
 0x885   :  { %1364 = vmatprep.subr.bf16.mxu1 %v2253_v48  ;;  %v2298_v48 = vld [vmem:[#allocation13 + $0x30] sm:$0xff]  }
 0x886   :  { %1322 = vmatpush1.bf16.msra.mxu0 %v2248_v49  ;;  %v2299_v49 = vld [vmem:[#allocation13 + $0xb0] sm:$0xff]  }
 0x887   :  { %1323 = vmatprep.subr.bf16.mxu0 %v2256_v51  ;;  %v2301_v51 = vld [vmem:[#allocation13 + $0xf8] sm:$0xff]  }
 0x888   :  { %1365 = vmatpush1.bf16.msra.mxu1 %v2251_v50  ;;  %v2300_v50 = vld [vmem:[#allocation13 + $0x78] sm:$0xff]  }
 0x889   :  { %1366 = vmatprep.subr.bf16.mxu1 %v2259_v23  ;;  %v2302_v23 = vld [vmem:[#allocation13 + $0x38] sm:$0xff]  }
 0x88a   :  { %1324 = vmatpush1.bf16.msra.mxu0 %v2254_v52  ;;  %v2303_v52 = vld [vmem:[#allocation13 + $0xb8] sm:$0xff]  }
 0x88b   :  { %1325 = vmatprep.subr.bf16.mxu0 %v2262_v54  ;;  %v1147_v54 = vsub.s32 3, %v2784_v57 }
 0x88c   :  { %1367 = vmatpush1.bf16.msra.mxu1 %v2257_v53  ;;  %v1131_v53 = vld [vmem:[%s2964_s11] sm:$0xf] }
 0x88d   :  { %1368 = vmatprep.subr.bf16.mxu1 %v2265_v55  ;;  %v1136_v55 = vrot.slane %v1131_v53, %v223_v60 }
 0x88e   :  { %1326 = vmatpush1.bf16.msra.mxu0 %v2260_v56  ;;  %v1144_v56 = vrot.slane %v1131_v53, %v231_v61 }
 0x88f   :  { %1327 = vmatprep.subr.bf16.mxu0 %v2268_v62  ;;  %v1148_v62 = vrot.slane %v1131_v53, %v1147_v54 }
 0x890   :  { %1369 = vmatpush1.bf16.msra.mxu1 %v2263_v59  ;;  %v1140_v59 = vrot.slane %v1131_v53, %v227_v58 }
 0x891   :  { %1370 = vmatprep.subr.bf16.mxu1 %v2271_v63 }
 0x892   :  { %1328 = vmatpush1.bf16.msra.mxu0 %v2266_v0 }
 0x893   :  { %2029 = vmatprep.subr.bf16.mxu0 %v2272_v21 }
 0x894   :  { %1371 = vmatpush1.bf16.msra.mxu1 %v2269_v1 }
 0x895   :  { %2051 = vmatprep.subr.bf16.mxu1 %v2273_v24 }
 0x90a   :  { %v1059_v31 = vpop.xlane.xlu1 %1058 }
 0x90b   :  { %v1062_v32 = vmul.f32 0.0078125, %v1059_v31  ;;  %v2281_v31 = vld [vmem:[#allocation13 + $0xd0] sm:$0xff]  }
 0x90c   :  { %v1061_v34 = vpop.xlane.xlu0 %1060 }
 0x90d   :  { %v2891_v35 = vsub.f32 %v2884_v22, %v1062_v32  ;;  %v1063_v36 = vmul.f32 0.0078125, %v1061_v34  ;;  %v2282_v32 = vld [vmem:[#allocation13 + $0x10] sm:$0xff]  }
 0x90e   :  { %v2283_v34 = vld [vmem:[#allocation13 + $0x90] sm:$0xff]  }
 0x90f   :  { %v2894_v37 = vsub.f32 %v2887_v33, %v1063_v36  ;;  %v1066_v38 = vmul.f32 %v2891_v35, %v2891_v35  ;;  %v2285_v36 = vld [vmem:[#allocation13 + $0xd8] sm:$0xff]  }
 0x911   :  { %1068 = vadd.xlane.f32.xlu0 %v1066_v38  ;;  %v1067_v39 = vmul.f32 %v2894_v37, %v2894_v37  ;;  %v2287_v38 = vld [vmem:[#allocation13 + $0x98] sm:$0xff]  }
 0x913   :  { %1070 = vadd.xlane.f32.xlu1 %v1067_v39  ;;  %v2288_v39 = vld [vmem:[#allocation13 + $0x60] sm:$0xff]  }
 0x99e   :  { %v1069_v2 = vpop.xlane.xlu0 %1068 }
 0x99f   :  { %v1072_v5 = vmul.f32 0.0078125, %v1069_v2 }
 0x9a0   :  { %v1071_v6 = vpop.xlane.xlu1 %1070 }
 0x9a1   :  { %v1074_v9 = vadd.f32 1e-05, %v1072_v5  ;;  %v1073_v10 = vmul.f32 0.0078125, %v1071_v6 }
 0x9a3   :  { %2324 = vrsqrt.f32 %v1074_v9  ;;  %v1075_v8 = vadd.f32 1e-05, %v1073_v10 }
 0x9a5   :  { %2326 = vrsqrt.f32 %v1075_v8 }
 0x9ad   :  { %v2325_v11 = vpop.eup %2324 }
 0x9ae   :  { %v1078_v13 = vmul.f32 %v2325_v11, %v2891_v35  ;;  %v2284_v35 = vld [vmem:[#allocation13 + $0x58] sm:$0xff]  }
 0x9af   :  { %v2327_v7 = vpop.eup %2326 }
 0x9b0   :  { %v1079_v14 = vmul.f32 %v2327_v7, %v2894_v37  ;;  %v1087_v15 = vmul.f32 %v1919_v12, %v1078_v13  ;;  %v2286_v37 = vld [vmem:[#allocation13 + $0x18] sm:$0xff]  }
 0x9b2   :  { %v1088_v17 = vmul.f32 %v1919_v12, %v1079_v14  ;;  %v1096_v18 = vadd.f32 %v1920_v16, %v1087_v15 }
 0x9b4   :  { %v1097_v19 = vadd.f32 %v1920_v16, %v1088_v17 }
 0x9b6   :  { %v1098_v20 = vpack.c.bf16 %v1097_v19, %v1096_v18 }
 0x9b8   :  { %1346 = vmatmul.mubr.bf16.vlgmr.msra.gmra.mrb[24].mxu0 %v1098_v20  ;;  %1389 = vmatmul.mubr.bf16.vlgmr.msra.gmra.mrb[24].mxu1 %v1098_v20 }
 0x9b9   :  { %2030 = vmatpush3.bf16.msra.mxu0 %v2274_v25  ;;  %2052 = vmatpush3.bf16.msra.mxu1 %v2275_v27 }
 0x9ba   :  { %2031 = vmatprep.subr.bf16.mxu0 %v2276_v28  ;;  %2053 = vmatprep.subr.bf16.mxu1 %v2277_v29 }
 0x9bd   :  { %2032 = vmatpush3.bf16.msra.mxu0 %v2278_v30  ;;  %2054 = vmatpush3.bf16.msra.mxu1 %v2279_v3 }
 0x9be   :  { %2033 = vmatprep.subr.bf16.mxu0 %v2280_v4  ;;  %2055 = vmatprep.subr.bf16.mxu1 %v2281_v31 }
 0x9c1   :  { %2034 = vmatpush3.bf16.msra.mxu0 %v2282_v32  ;;  %2056 = vmatpush3.bf16.msra.mxu1 %v2283_v34 }
 0x9c2   :  { %2035 = vmatprep.subr.bf16.mxu0 %v2284_v35  ;;  %2057 = vmatprep.subr.bf16.mxu1 %v2285_v36 }
 0x9c5   :  { %2036 = vmatpush3.bf16.msra.mxu0 %v2286_v37  ;;  %2058 = vmatpush3.bf16.msra.mxu1 %v2287_v38 }
 0x9c6   :  { %2037 = vmatprep.subr.bf16.mxu0 %v2288_v39  ;;  %2059 = vmatprep.subr.bf16.mxu1 %v2289_v40 }
 0x9c9   :  { %2038 = vmatpush3.bf16.msra.mxu0 %v2290_v26  ;;  %2060 = vmatpush3.bf16.msra.mxu1 %v2291_v41 }
 0x9ca   :  { %2039 = vmatprep.subr.bf16.mxu0 %v2292_v42  ;;  %2061 = vmatprep.subr.bf16.mxu1 %v2293_v43 }
 0x9cd   :  { %2040 = vmatpush3.bf16.msra.mxu0 %v2294_v44  ;;  %2062 = vmatpush3.bf16.msra.mxu1 %v2295_v45 }
 0x9ce   :  { %2041 = vmatprep.subr.bf16.mxu0 %v2296_v46  ;;  %2063 = vmatprep.subr.bf16.mxu1 %v2297_v47 }
 0x9d1   :  { %2042 = vmatpush3.bf16.msra.mxu0 %v2298_v48  ;;  %2064 = vmatpush3.bf16.msra.mxu1 %v2299_v49 }
 0x9d2   :  { %2043 = vmatprep.subr.bf16.mxu0 %v2300_v50  ;;  %2065 = vmatprep.subr.bf16.mxu1 %v2301_v51 }
 0x9d5   :  { %2044 = vmatpush3.bf16.msra.mxu0 %v2302_v23  ;;  %2066 = vmatpush3.bf16.msra.mxu1 %v2303_v52 }
 0xa8b   :  { %v1347_v63 = vpop.f32.mrb[24].mxu0  ;;  %v1390_v0 = vpop.f32.mrb[24].mxu1 }
 0xa8c   :  { %v2918_v1 = vadd.f32 %v1347_v63, %v1136_v55  ;;  %v2920_v2 = vadd.f32 %v1390_v0, %v1144_v56  ;;  %v1349_v5 = vpop.f32.mrb[25].mxu0  ;;  %v1392_v6 = vpop.f32.mrb[25].mxu1 }
 0xa8d   :  { %v2922_v9 = vadd.f32 %v1349_v5, %v1140_v59  ;;  %v2924_v10 = vadd.f32 %v1392_v6, %v1148_v62  ;;  %v1351_v60 = vpop.f32.mrb[26].mxu0  ;;  %v1394_v8 = vpop.f32.mrb[26].mxu1 }
 0xa8e   :  { %v1953_v61 = vmul.f32 -1.702, %v2918_v1  ;;  %v1955_v57 = vmul.f32 -1.702, %v2920_v2  ;;  %v1352_v58 = vadd.f32 %v1351_v60, %v1136_v55  ;;  %v1395_v11 = vadd.f32 %v1394_v8, %v1144_v56  ;;  %v1353_v12 = vpop.f32.mrb[27].mxu0  ;;  %v1396_v13 = vpop.f32.mrb[27].mxu1 }
 0xa8f   :  { %v1954_v7 = vmul.f32 -1.702, %v2922_v9  ;;  %v1956_v14 = vmul.f32 -1.702, %v2924_v10  ;;  %v1354_v15 = vadd.f32 %v1353_v12, %v1140_v59  ;;  %v1397_v16 = vadd.f32 %v1396_v13, %v1148_v62 }
 0xa90   :  { %v1415_v17 = vmul.f32 1.442695, %v1953_v61  ;;  %v1419_v18 = vmul.f32 1.442695, %v1955_v57  ;;  %v1957_v19 = vmul.f32 -1.702, %v1352_v58 }
 0xa91   :  { %v1417_v20 = vmul.f32 1.442695, %v1954_v7  ;;  %v1421_v21 = vmul.f32 1.442695, %v1956_v14  ;;  %v1959_v24 = vmul.f32 -1.702, %v1395_v11 }
 0xa92   :  { %2328 = vpow2.f32 %v1415_v17  ;;  %v1423_v25 = vmul.f32 1.442695, %v1957_v19  ;;  %v1958_v27 = vmul.f32 -1.702, %v1354_v15  ;;  %v1960_v28 = vmul.f32 -1.702, %v1397_v16 }
 0xa93   :  { %2330 = vpow2.f32 %v1419_v18  ;;  %v1427_v29 = vmul.f32 1.442695, %v1959_v24 }
 0xa94   :  { %2332 = vpow2.f32 %v1417_v20  ;;  %v1425_v30 = vmul.f32 1.442695, %v1958_v27  ;;  %v1429_v3 = vmul.f32 1.442695, %v1960_v28  ;;  %v2363_v28 = vld [vmem:[#allocation2 + $0x8] sm:$0xff] }
 0xa95   :  { %2334 = vpow2.f32 %v1421_v21  ;;  %v2362_v21 = vld [vmem:[#allocation2] sm:$0xff] }
 0xa96   :  { %2336 = vpow2.f32 %v1423_v25 }
 0xa97   :  { %2338 = vpow2.f32 %v1427_v29 }
 0xa98   :  { %2340 = vpow2.f32 %v1425_v30 }
 0xa99   :  { %2342 = vpow2.f32 %v1429_v3 }
 0xa9c   :  { %v2329_v4 = vpop.eup %2328 }
 0xa9d   :  { %v2331_v31 = vpop.eup %2330  ;;  %v1431_v32 = vadd.f32 1.0, %v2329_v4 }
 0xa9e   :  { %v2333_v34 = vpop.eup %2332  ;;  %v1433_v35 = vadd.f32 1.0, %v2331_v31 }
 0xa9f   :  { %v2335_v36 = vpop.eup %2334  ;;  %2344 = vrcp.f32 %v1431_v32  ;;  %v1432_v37 = vadd.f32 1.0, %v2333_v34 }
 0xaa0   :  { %v2337_v38 = vpop.eup %2336  ;;  %2346 = vrcp.f32 %v1433_v35  ;;  %v1434_v39 = vadd.f32 1.0, %v2335_v36 }
 0xaa1   :  { %v2339_v40 = vpop.eup %2338  ;;  %2348 = vrcp.f32 %v1432_v37  ;;  %v1435_v26 = vadd.f32 1.0, %v2337_v38 }
 0xaa2   :  { %v2341_v41 = vpop.eup %2340  ;;  %2350 = vrcp.f32 %v1434_v39  ;;  %v1437_v42 = vadd.f32 1.0, %v2339_v40 }
 0xaa3   :  { %v2343_v43 = vpop.eup %2342  ;;  %2352 = vrcp.f32 %v1435_v26  ;;  %v1436_v44 = vadd.f32 1.0, %v2341_v41 }
 0xaa4   :  { %2354 = vrcp.f32 %v1437_v42  ;;  %v1438_v45 = vadd.f32 1.0, %v2343_v43 }
 0xaa5   :  { %2356 = vrcp.f32 %v1436_v44 }
 0xaa6   :  { %2358 = vrcp.f32 %v1438_v45 }
 0xaa9   :  { %v2345_v46 = vpop.eup %2344 }
 0xaaa   :  { %v2347_v47 = vpop.eup %2346  ;;  %v1455_v23 = vmul.f32 %v2345_v46, %v2918_v1 }
 0xaab   :  { %v2349_v48 = vpop.eup %2348  ;;  %v1457_v54 = vmul.f32 %v2347_v47, %v2920_v2  ;;  %v1961_v2 = vld [vmem:[%s2966_s13] ss:$0 sm:$0xff]  ;;  %s2568_s13 = smov [#allocation14]  }
 0xaac   :  { %v2351_v49 = vpop.eup %2350  ;;  %v1456_v59 = vmul.f32 %v2349_v48, %v2922_v9  ;;  %s1862_s4 = sshll.u32 %s2568_s13, 4  ;;  %s1863_s4 = int_to_ptr.vmem [resolvable:$true] %s1862_s4 }
 0xaad   :  { %v2353_v50 = vpop.eup %2352  ;;  %v1458_v0 = vmul.f32 %v2351_v49, %v2924_v10  ;;  %s2518_s1 = scalar_lea.vmem %s1863_s4, 32  ;;  %p2523_p1 = scmp.lt.s32.totalorder %s1863_s4, %s1863_s4 }
 0xaae   :  { %v2355_v51 = vpop.eup %2354  ;;  %v1459_v52 = vmul.f32 %v2353_v50, %v1352_v58  ;;  %p2519_p0 = scmp.ne.s32.totalorder %s1863_s4, %s2518_s1  ;;  %p2524_p2 = scmp.lt.s32.totalorder %s2518_s1, %s2518_s1 }
 0xaaf   :  { %v2357_v53 = vpop.eup %2356  ;;  %v1461_v55 = vmul.f32 %v2355_v51, %v1395_v11 }
 0xab0   :  { %v2359_v56 = vpop.eup %2358  ;;  %v1463_v62 = vpack.c.bf16 %v1459_v52, %v1455_v23  ;;  %v1460_v63 = vmul.f32 %v2357_v53, %v1354_v15  ;;  %p2525_p3 = por %p2524_p2, %p2523_p1 }
 0xab1   :  { %v1465_v5 = vpack.c.bf16 %v1461_v55, %v1457_v54  ;;  %v1462_v6 = vmul.f32 %v2359_v56, %v1397_v16 }
 0xab2   :  { %v1464_v60 = vpack.c.bf16 %v1460_v63, %v1456_v59  ;;  %p2526_p4 = pnand %p2525_p3, %p2519_p0 }
 0xab3   :  { %v1466_v8 = vpack.c.bf16 %v1462_v6, %v1458_v0 }
 0xab4   :  { %1762 = vmatprep.mubr.bf16.mxu0 %v1464_v60 }
 0xab5   :  { %1803 = vmatprep.mubr.bf16.mxu1 %v1466_v8  ;;  %1763 = vmatmul.mubr.bf16.vlgmr.msra.gmra.mrb[28].mxu0 %v1463_v62 }
 0xab6   :  { %1804 = vmatmul.mubr.bf16.vlgmr.msra.gmra.mrb[28].mxu1 %v1465_v5 }
 0xb88   :  { %v2045_v1 = vpop.f32.mrb[28].mxu0 }
 0xb89   :  { %v2067_v61 = vpop.f32.mrb[28].mxu1  ;;  %v2046_v57 = vpop.f32.mrb[29].mxu0 }
 0xb8a   :  { %v2047_v9 = vadd.f32 %v2046_v57, %v2045_v1  ;;  %v2068_v58 = vpop.f32.mrb[29].mxu1  ;;  %v2048_v11 = vpop.f32.mrb[30].mxu0 }
 0xb8b   :  { %v2069_v12 = vadd.f32 %v2068_v58, %v2067_v61  ;;  %v2070_v10 = vpop.f32.mrb[30].mxu1  ;;  %v2049_v13 = vpop.f32.mrb[31].mxu0 }
 0xb8c   :  { %v1765_v7 = vadd.f32 %v2047_v9, %v1961_v2  ;;  %v2050_v14 = vadd.f32 %v2049_v13, %v2048_v11  ;;  %v2071_v15 = vpop.f32.mrb[31].mxu1 }
 0xb8d   :  { %v2072_v16 = vadd.f32 %v2071_v15, %v2070_v10 }
 0xb8e   :  { %v1806_v17 = vadd.f32 %v2069_v12, %v1765_v7  ;;  %v1768_v18 = vadd.f32 %v2050_v14, %v1961_v2 }
 0xb90   :  { %v1812_v19 = vadd.f32 %v1806_v17, %v2884_v22  ;;  %v1809_v20 = vadd.f32 %v2072_v16, %v1768_v18 }
 0xb92   :  { %v1814_v24 = vadd.f32 %v2362_v21, %v1812_v19  ;;  %v1813_v25 = vadd.f32 %v1809_v20, %v2887_v33 }
 0xb94   :  { %v1816_v27 = vrot.slane %v1814_v24, 4  ;;  %v1815_v29 = vadd.f32 %v2363_v28, %v1813_v25 }
 0xb96   :  { %v1817_v30 = vadd.f32 %v1816_v27, %v1814_v24  ;;  %v1822_v3 = vrot.slane %v1815_v29, 4 }
 0xb98   :  { %v1818_v4 = vrot.slane %v1817_v30, 2  ;;  %v1823_v31 = vadd.f32 %v1822_v3, %v1815_v29 }
 0xb9a   :  { %v1824_v32 = vrot.slane %v1823_v31, 2  ;;  %v1819_v34 = vadd.f32 %v1818_v4, %v1817_v30 }
 0xb9c   :  { %v1820_v35 = vrot.slane %v1819_v34, 1  ;;  %v1825_v36 = vadd.f32 %v1824_v32, %v1823_v31 }
 0xb9e   :  { %v1821_v37 = vadd.f32 %v1820_v35, %v1819_v34  ;;  %v1826_v38 = vrot.slane %v1825_v36, 1 }
 0xba0   :  { %v1827_v39 = vadd.f32 %v1826_v38, %v1825_v36  ;;  %v1829_v22 = vmul.f32 0.125, %v1821_v37 }
 0xba2   :  { %v1830_v40 = vmul.f32 0.125, %v1827_v39  ;;  %v1831_v26 = vmul.f32 %v1829_v22, %v1829_v22 }
 0xba4   :  { %v1832_v41 = vmul.f32 %v1830_v40, %v1830_v40 }
 0xba6   :  { %v1836_v33 = vsel %vm1835_vm4, %v1832_v41, %v1831_v26 }
 0xba7   :  { %v1839_v42 = vsel %vm1838_vm5, %v1836_v33, 0.0 }
 0xba8   :  { %1840 = vadd.xlane.f32.xlu0 %v1839_v42 }
 0xc35   :  { %v1841_v43 = vpop.xlane.xlu0 %1840 }
 0xc36   :  { %v1842_v44 = vmax.f32 %v1841_v43, 1e-24 }
 0xc38   :  { %2360 = vrsqrt.f32 %v1842_v44 }
 0xc42   :  { %v2361_v45 = vpop.eup %2360 }
 0xc43   :  { %v1845_v46 = vrot.slane %v2361_v45, 1  ;;  %v1848_v48 = vmul.f32 %v2361_v45, %v1829_v22 }
 0xc45   :  { %v1849_v47 = vmul.f32 %v1845_v46, %v1830_v40 }
 0xc47   :  { %v1852_v49 = vrot.slane %v1849_v47, 7 }
 0xc49   :  { %v1853_v50 = vsel %vm1835_vm4, %v1852_v49, %v1848_v48 }
 0xc4a   :  { %1855 = vst [vmem:[#allocation14] sm:$0x3] %v1853_v50 }
 0xc4b   :  { %2529 = shalt.err (!%p2526_p4)
}
 0xc4c   :  { %s2530_s23 = scalar_lea.hbm %s2967_s14, 32 }
 0xc4d   :  { %p2531_p5 = scmp.ne.s32.totalorder %s2967_s14, %s2530_s23  ;;  %p2534_p6 = scmp.lt.u32.totalorder %s2530_s23, %s2967_s14 }
 0xc4f   :  { %p2536_p7 = pnand %p2534_p6, %p2531_p5 }
 0xc51   :  { %2539 = shalt.err (!%p2536_p7)
}
 0xc52   :  { %1865 = dma.vmem_to_hbm [thread:$0]  %s1863_s4, 32, %s2967_s14, [#allocation4]  }
 0xc53   :  { %2548 = dma.done.wait [#allocation4], 32  }
 0xc54   :  { %2549 = vsyncadd [#allocation4], 4294967264 }
 0xc55   :  { %1869 = vsyncpa [#allocation3], 1 }
 0xc56   :  { %1870 = vsyncpa [#allocation6], 1 }
 0xc57   :  { %1871 = vsyncpa [#allocation9], 1 }
 0xc58   :  { %1872 = vsyncpa [#allocation12], 1 }
 0xc59   :  { %1873 = vsyncpa [#allocation4], 1 }

</bundles_post_ra>
